<compile_context>
chip_gen: v6e
topology: v6e:2x2x1
jax: 0.10.0
libtpu: 0.0.40
codegen_flags: <defaults>
</compile_context>

<pallas_src>
import functools
import math

import numpy as np
import jax
import jax.numpy as jnp
from jax.experimental import pallas as pl
from jax.experimental.pallas import tpu as pltpu


# ----------------------------- kernel helpers -----------------------------

def _celu(x):
    # CELU(alpha=1): x if x > 0 else exp(x) - 1.  min() keeps the discarded
    # branch finite for large positive inputs.
    return jnp.where(x > 0, x, jnp.exp(jnp.minimum(x, 0.0)) - 1.0)


def _relu(x):
    return jnp.maximum(x, 0.0)


# ------------------------------- the kernel --------------------------------

def _encoder_kernel(n_res, L, final_mode, *refs):
    # refs = x, w1, b1, (rw1, rb1, rw2, rb2) * n_res, wf, bf, out
    x_ref = refs[0]
    w1_ref, b1_ref = refs[1], refs[2]
    res_refs = refs[3:3 + 4 * n_res]
    wf_ref = refs[3 + 4 * n_res]
    bf_ref = refs[4 + 4 * n_res]
    out_ref = refs[5 + 4 * n_res]

    rows = x_ref.shape[0]            # Bt * L flattened batch rows
    bt = rows // L
    H = w1_ref.shape[1]

    # Conv1d(channel -> H, kernel_size=1) == pointwise matmul, then CELU.
    x = x_ref[...].astype(w1_ref.dtype)                       # (rows, C)
    h = jnp.dot(x, w1_ref[...], preferred_element_type=jnp.float32)
    h = _celu(h + b1_ref[...].astype(jnp.float32))            # (rows, H) f32

    # Hoisted position index (mod L) and per-offset boundary masks.  These
    # zero both the 'same' padding positions and any roll leakage across
    # batch boundaries in the flattened (Bt*L) layout.
    pos = jax.lax.broadcasted_iota(jnp.int32, (rows, H), 0) % L
    masks = {off: (pos + off >= 0) & (pos + off < L) for off in (-2, -1, 1, 2)}

    def conv5_im2col(a, w2d_ref, b_ref):
        # a: (rows, H) f32; w2d_ref: (5*H, H) = taps stacked along rows.
        a = a.astype(w2d_ref.dtype)      # cast ONCE before the 5 shifted copies
        cols = []
        for t in range(5):
            off = t - 2                                        # need a[r + off]
            if off == 0:
                cols.append(a)
            else:
                shifted = pltpu.roll(a, shift=(-off) % rows, axis=0)
                cols.append(jnp.where(masks[off], shifted, 0.0))
        im = jnp.concatenate(cols, axis=1)                     # (rows, 5*H)
        y = jnp.dot(im, w2d_ref[...], preferred_element_type=jnp.float32)
        return y + b_ref[...].astype(jnp.float32)

    # Residual blocks.
    for i in range(n_res):
        rw1, rb1, rw2, rb2 = res_refs[4 * i:4 * i + 4]
        t = _relu(conv5_im2col(h, rw1, rb1))
        t = conv5_im2col(t, rw2, rb2)
        h = _relu(h + t)

    # Conv1d(H -> E, kernel_size=L) over the full length == one contraction
    # over L*H against wf reshaped to (L*H, E) in the wrapper.  Row-major
    # (Bt*L, H) and (Bt, L*H) are the same flat layout, so a single reshape
    # suffices (no per-position slice+concat).
    if final_mode == "reshape":
        hb = h.reshape(bt, L * H)                              # (Bt, L*H)
    else:
        # Proven fallback (identical semantics): gather positions along lanes.
        h3 = h.reshape(bt, L, H)
        hb = jnp.concatenate([h3[:, l, :] for l in range(L)], axis=1)

    y = jnp.dot(hb.astype(wf_ref.dtype), wf_ref[...],
                preferred_element_type=jnp.float32)
    y = y + bf_ref[...].astype(jnp.float32)                    # (Bt, E)
    out_ref[0] = y.astype(out_ref.dtype)


# ------------------------------- wrapper ------------------------------------

def _build_and_call(x_rows, params, *, n_res, L, bs, batch_block, mm_dtype,
                    final_mode, out_dtype):
    C = x_rows.shape[1]
    H = params["w1"].shape[1]
    E = params["bf"].shape[1]
    nb = bs // batch_block
    rows = batch_block * L

    wcast = lambda w: w.astype(mm_dtype)

    args = [x_rows, wcast(params["w1"]), params["b1"]]
    in_specs = [
        pl.BlockSpec((rows, C), lambda b: (b, 0)),
        pl.BlockSpec((C, H), lambda b: (0, 0)),
        pl.BlockSpec((1, H), lambda b: (0, 0)),
    ]
    for i in range(n_res):
        rw1, rb1, rw2, rb2 = params["res"][i]
        args += [wcast(rw1.reshape(5 * H, H)), rb1,
                 wcast(rw2.reshape(5 * H, H)), rb2]
        in_specs += [
            pl.BlockSpec((5 * H, H), lambda b: (0, 0)),
            pl.BlockSpec((1, H), lambda b: (0, 0)),
            pl.BlockSpec((5 * H, H), lambda b: (0, 0)),
            pl.BlockSpec((1, H), lambda b: (0, 0)),
        ]
    args += [wcast(params["wf"].reshape(L * H, E)), params["bf"]]
    in_specs += [
        pl.BlockSpec((L * H, E), lambda b: (0, 0)),
        pl.BlockSpec((1, E), lambda b: (0, 0)),
    ]

    out = pl.pallas_call(
        functools.partial(_encoder_kernel, n_res, L, final_mode),
        out_shape=jax.ShapeDtypeStruct((nb, batch_block, E), out_dtype),
        grid=(nb,),
        in_specs=in_specs,
        out_specs=pl.BlockSpec((1, batch_block, E), lambda b: (b, 0, 0)),
        compiler_params=pltpu.CompilerParams(
            dimension_semantics=("parallel",)),
    )(*args)
    return out.reshape(bs, E)


def encoder_forward(x_ncl, params, *, n_res, batch_block=None, mm_dtype=None,
                    final_mode="auto"):
    bs, C, L = x_ncl.shape

    # Single grid step for small work; split 2-way (one chunk per v7x TC) only
    # when each chunk gets at least ~1024 flattened rows.
    if batch_block is None:
        half_rows = (bs // 2) * L
        if bs % 2 == 0 and half_rows >= 1024 and half_rows % 8 == 0:
            batch_block = bs // 2
        else:
            batch_block = bs
    assert bs % batch_block == 0
    rows = batch_block * L
    assert rows == bs * L or rows % 8 == 0, "per-chunk rows must be divisible by 8"

    # bf16 MXU inputs only when the matmuls are big enough to be MXU-bound;
    # elementwise math / bias adds / accumulation always stay f32.
    if mm_dtype is None:
        mm_dtype = jnp.bfloat16 if bs * L >= 2048 else jnp.float32

    # Layout glue (plain JAX, outside the kernel): NCL -> NLC -> (bs*L, C).
    x_rows = jnp.transpose(x_ncl, (0, 2, 1)).reshape(bs * L, C)

    modes = ("reshape", "concat") if final_mode == "auto" else (final_mode,)
    last_err = None
    for mode in modes:
        try:
            out = _build_and_call(x_rows, params, n_res=n_res, L=L, bs=bs,
                                  batch_block=batch_block, mm_dtype=mm_dtype,
                                  final_mode=mode, out_dtype=x_ncl.dtype)
            return jax.block_until_ready(out)
        except Exception as e:  # fall back to the proven concat epilogue
            last_err = e
    raise last_err


# ------------------------- deterministic parameters -------------------------

def init_params(key, C, H, E, L, n_res):
    def nrm(k, shape, scale):
        return (scale * jax.random.normal(k, shape, jnp.float32)).astype(jnp.float32)

    ks = list(jax.random.split(key, 4 + 4 * n_res))
    params = {
        "w1": nrm(ks.pop(), (C, H), 1.0 / math.sqrt(C)),       # Conv1d(4,H,1), transposed
        "b1": nrm(ks.pop(), (1, H), 0.05),
        "res": [],
    }
    for _ in range(n_res):
        rw1 = nrm(ks.pop(), (5, H, H), 1.0 / math.sqrt(5 * H))  # (tap, Cin, Cout)
        rb1 = nrm(ks.pop(), (1, H), 0.05)
        rw2 = nrm(ks.pop(), (5, H, H), 1.0 / math.sqrt(5 * H))
        rb2 = nrm(ks.pop(), (1, H), 0.05)
        params["res"].append((rw1, rb1, rw2, rb2))
    params["wf"] = nrm(ks.pop(), (L, H, E), 1.0 / math.sqrt(L * H))  # Conv1d(H,E,L), transposed
    params["bf"] = nrm(ks.pop(), (1, E), 0.05)
    return params


# ---------------------------- pure-JAX reference ----------------------------

def _ref_conv5(h, w, b):
    bs, L, cin = h.shape
    hp = jnp.pad(h, ((0, 0), (2, 2), (0, 0)))
    out = jnp.zeros((bs, L, w.shape[2]), h.dtype)
    for t in range(5):
        out = out + jnp.einsum("blc,co->blo", hp[:, t:t + L, :], w[t],
                               precision=jax.lax.Precision.HIGHEST)
    return out + b


def reference_forward(x_ncl, params, *, n_res):
    x = jnp.transpose(x_ncl, (0, 2, 1))                  # (bs, L, C)
    h = jnp.einsum("blc,ch->blh", x, params["w1"],
                   precision=jax.lax.Precision.HIGHEST) + params["b1"]
    h = jnp.where(h > 0, h, jnp.exp(h) - 1.0)            # CELU
    for i in range(n_res):
        rw1, rb1, rw2, rb2 = params["res"][i]
        t = jnp.maximum(_ref_conv5(h, rw1, rb1), 0.0)
        t = _ref_conv5(t, rw2, rb2)
        h = jnp.maximum(h + t, 0.0)
    y = jnp.einsum("blh,lhe->be", h, params["wf"],
                   precision=jax.lax.Precision.HIGHEST) + params["bf"]
    return y


# ----------------------------------- main ------------------------------------

if __name__ == "__main__":
    # args: h_channel=32, sequence_length=16, embedding_size=32, resblock_num=2,
    #       distance_mode='euclidean'; input channel fixed at 4.
    bs, C, L, H, E, n_res = 2, 4, 16, 32, 32, 2

    key = jax.random.PRNGKey(0)
    kx, kp = jax.random.split(key)
    x = jax.random.normal(kx, (bs, C, L), jnp.float32)   # NCL, as in PyTorch

    params = init_params(kp, C, H, E, L, n_res)
    ref = reference_forward(x, params, n_res=n_res)

    # Default path: single grid step, f32 MXU inputs (latency-bound sizes).
    out = encoder_forward(x, params, n_res=n_res)
    out = jax.block_until_ready(out)
    assert out.shape == (bs, E)
    np.testing.assert_allclose(np.asarray(out), np.asarray(ref),
                               rtol=1e-2, atol=1e-2)

    print("KERNEL_OK")
</pallas_src>

<mosaic_0001>
module attributes {stable_mosaic.version = 11 : i64} {
  func.func @_encoder_kernel(%arg0: i32, %arg1: memref<32x4xf32, #tpu.memory_space<vmem>>, %arg2: memref<4x32xf32, #tpu.memory_space<vmem>>, %arg3: memref<1x32xf32, #tpu.memory_space<vmem>>, %arg4: memref<160x32xf32, #tpu.memory_space<vmem>>, %arg5: memref<1x32xf32, #tpu.memory_space<vmem>>, %arg6: memref<160x32xf32, #tpu.memory_space<vmem>>, %arg7: memref<1x32xf32, #tpu.memory_space<vmem>>, %arg8: memref<160x32xf32, #tpu.memory_space<vmem>>, %arg9: memref<1x32xf32, #tpu.memory_space<vmem>>, %arg10: memref<160x32xf32, #tpu.memory_space<vmem>>, %arg11: memref<1x32xf32, #tpu.memory_space<vmem>>, %arg12: memref<512x32xf32, #tpu.memory_space<vmem>>, %arg13: memref<1x32xf32, #tpu.memory_space<vmem>>, %arg14: memref<1x2x32xf32, #tpu.memory_space<vmem>>) attributes {dimension_semantics = [#tpu.dimension_semantics<parallel>], iteration_bounds = array<i64: 1>, scalar_prefetch = 0 : i64, scratch_operands = 0 : i64, tpu.core_type = #tpu.core_type<tc>, window_params = [{transform_indices = @transform_0, window_bounds = array<i64: 32, 4>}, {pipeline_mode = #tpu.pipeline_mode<synchronous>, transform_indices = @transform_1, window_bounds = array<i64: 4, 32>}, {pipeline_mode = #tpu.pipeline_mode<synchronous>, transform_indices = @transform_2, window_bounds = array<i64: 1, 32>}, {pipeline_mode = #tpu.pipeline_mode<synchronous>, transform_indices = @transform_3, window_bounds = array<i64: 160, 32>}, {pipeline_mode = #tpu.pipeline_mode<synchronous>, transform_indices = @transform_4, window_bounds = array<i64: 1, 32>}, {pipeline_mode = #tpu.pipeline_mode<synchronous>, transform_indices = @transform_5, window_bounds = array<i64: 160, 32>}, {pipeline_mode = #tpu.pipeline_mode<synchronous>, transform_indices = @transform_6, window_bounds = array<i64: 1, 32>}, {pipeline_mode = #tpu.pipeline_mode<synchronous>, transform_indices = @transform_7, window_bounds = array<i64: 160, 32>}, {pipeline_mode = #tpu.pipeline_mode<synchronous>, transform_indices = @transform_8, window_bounds = array<i64: 1, 32>}, {pipeline_mode = #tpu.pipeline_mode<synchronous>, transform_indices = @transform_9, window_bounds = array<i64: 160, 32>}, {pipeline_mode = #tpu.pipeline_mode<synchronous>, transform_indices = @transform_10, window_bounds = array<i64: 1, 32>}, {pipeline_mode = #tpu.pipeline_mode<synchronous>, transform_indices = @transform_11, window_bounds = array<i64: 512, 32>}, {pipeline_mode = #tpu.pipeline_mode<synchronous>, transform_indices = @transform_12, window_bounds = array<i64: 1, 32>}, {transform_indices = @transform_13, window_bounds = array<i64: 1, 2, 32>}]} {
    %c0 = arith.constant 0 : index
    %c0_0 = arith.constant 0 : index
    %0 = vector.load %arg1[%c0, %c0_0] : memref<32x4xf32, #tpu.memory_space<vmem>>, vector<32x4xf32>
    %c0_1 = arith.constant 0 : index
    %c0_2 = arith.constant 0 : index
    %1 = vector.load %arg2[%c0_1, %c0_2] : memref<4x32xf32, #tpu.memory_space<vmem>>, vector<4x32xf32>
    %cst = arith.constant dense<0.000000e+00> : vector<32x32xf32>
    %2 = tpu.matmul %0, %1, %cst {dimension_numbers = #tpu.dot_dimension_numbers<[1], [0], [0], [1], [0, 0, 1, 1], [], []>} : vector<32x4xf32>, vector<4x32xf32>, vector<32x32xf32> -> vector<32x32xf32>
    %c0_3 = arith.constant 0 : index
    %c0_4 = arith.constant 0 : index
    %3 = vector.load %arg3[%c0_3, %c0_4] : memref<1x32xf32, #tpu.memory_space<vmem>>, vector<1x32xf32>
    %4 = vector.broadcast %3 : vector<1x32xf32> to vector<32x32xf32>
    %5 = arith.addf %2, %4 : vector<32x32xf32>
    %cst_5 = arith.constant 0.000000e+00 : f32
    %6 = vector.broadcast %cst_5 : f32 to vector<32x32xf32>
    %7 = arith.cmpf ogt, %5, %6 : vector<32x32xf32>
    %cst_6 = arith.constant 0.000000e+00 : f32
    %8 = vector.broadcast %cst_6 : f32 to vector<32x32xf32>
    %9 = arith.minimumf %5, %8 : vector<32x32xf32>
    %10 = math.exp %9 : vector<32x32xf32>
    %cst_7 = arith.constant 1.000000e+00 : f32
    %11 = vector.broadcast %cst_7 : f32 to vector<32x32xf32>
    %12 = arith.subf %10, %11 : vector<32x32xf32>
    %13 = arith.select %7, %5, %12 : vector<32x32xi1>, vector<32x32xf32>
    %14 = tpu.iota {dimensions = array<i32: 0>} : vector<32x32xi32>
    %c16_i32 = arith.constant 16 : i32
    %c0_i32 = arith.constant 0 : i32
    %15 = arith.cmpi eq, %c16_i32, %c0_i32 : i32
    %c1_i32 = arith.constant 1 : i32
    %16 = arith.select %15, %c1_i32, %c16_i32 : i32
    %17 = vector.broadcast %16 : i32 to vector<32x32xi32>
    %18 = arith.remsi %14, %17 : vector<32x32xi32>
    %c0_i32_8 = arith.constant 0 : i32
    %19 = vector.broadcast %c0_i32_8 : i32 to vector<32x32xi32>
    %20 = arith.cmpi ne, %18, %19 : vector<32x32xi32>
    %c0_i32_9 = arith.constant 0 : i32
    %21 = vector.broadcast %c0_i32_9 : i32 to vector<32x32xi32>
    %22 = arith.cmpi slt, %18, %21 : vector<32x32xi32>
    %c0_i32_10 = arith.constant 0 : i32
    %23 = arith.cmpi slt, %16, %c0_i32_10 : i32
    %24 = vector.broadcast %23 : i1 to vector<32x32xi1>
    %25 = vector.broadcast %24 : vector<32x32xi1> to vector<32x32xi1>
    %26 = arith.xori %22, %25 : vector<32x32xi1>
    %27 = arith.andi %26, %20 : vector<32x32xi1>
    %28 = vector.broadcast %16 : i32 to vector<32x32xi32>
    %29 = arith.addi %18, %28 : vector<32x32xi32>
    %30 = arith.select %27, %29, %18 : vector<32x32xi1>, vector<32x32xi32>
    %c-2_i32 = arith.constant -2 : i32
    %31 = vector.broadcast %c-2_i32 : i32 to vector<32x32xi32>
    %32 = arith.addi %30, %31 : vector<32x32xi32>
    %c0_i32_11 = arith.constant 0 : i32
    %33 = vector.broadcast %c0_i32_11 : i32 to vector<32x32xi32>
    %34 = arith.cmpi sge, %32, %33 : vector<32x32xi32>
    %c-2_i32_12 = arith.constant -2 : i32
    %35 = vector.broadcast %c-2_i32_12 : i32 to vector<32x32xi32>
    %36 = arith.addi %30, %35 : vector<32x32xi32>
    %c16_i32_13 = arith.constant 16 : i32
    %37 = vector.broadcast %c16_i32_13 : i32 to vector<32x32xi32>
    %38 = arith.cmpi slt, %36, %37 : vector<32x32xi32>
    %39 = arith.andi %34, %38 : vector<32x32xi1>
    %c-1_i32 = arith.constant -1 : i32
    %40 = vector.broadcast %c-1_i32 : i32 to vector<32x32xi32>
    %41 = arith.addi %30, %40 : vector<32x32xi32>
    %c0_i32_14 = arith.constant 0 : i32
    %42 = vector.broadcast %c0_i32_14 : i32 to vector<32x32xi32>
    %43 = arith.cmpi sge, %41, %42 : vector<32x32xi32>
    %c-1_i32_15 = arith.constant -1 : i32
    %44 = vector.broadcast %c-1_i32_15 : i32 to vector<32x32xi32>
    %45 = arith.addi %30, %44 : vector<32x32xi32>
    %c16_i32_16 = arith.constant 16 : i32
    %46 = vector.broadcast %c16_i32_16 : i32 to vector<32x32xi32>
    %47 = arith.cmpi slt, %45, %46 : vector<32x32xi32>
    %48 = arith.andi %43, %47 : vector<32x32xi1>
    %c1_i32_17 = arith.constant 1 : i32
    %49 = vector.broadcast %c1_i32_17 : i32 to vector<32x32xi32>
    %50 = arith.addi %30, %49 : vector<32x32xi32>
    %c0_i32_18 = arith.constant 0 : i32
    %51 = vector.broadcast %c0_i32_18 : i32 to vector<32x32xi32>
    %52 = arith.cmpi sge, %50, %51 : vector<32x32xi32>
    %c1_i32_19 = arith.constant 1 : i32
    %53 = vector.broadcast %c1_i32_19 : i32 to vector<32x32xi32>
    %54 = arith.addi %30, %53 : vector<32x32xi32>
    %c16_i32_20 = arith.constant 16 : i32
    %55 = vector.broadcast %c16_i32_20 : i32 to vector<32x32xi32>
    %56 = arith.cmpi slt, %54, %55 : vector<32x32xi32>
    %57 = arith.andi %52, %56 : vector<32x32xi1>
    %c2_i32 = arith.constant 2 : i32
    %58 = vector.broadcast %c2_i32 : i32 to vector<32x32xi32>
    %59 = arith.addi %30, %58 : vector<32x32xi32>
    %c0_i32_21 = arith.constant 0 : i32
    %60 = vector.broadcast %c0_i32_21 : i32 to vector<32x32xi32>
    %61 = arith.cmpi sge, %59, %60 : vector<32x32xi32>
    %c2_i32_22 = arith.constant 2 : i32
    %62 = vector.broadcast %c2_i32_22 : i32 to vector<32x32xi32>
    %63 = arith.addi %30, %62 : vector<32x32xi32>
    %c16_i32_23 = arith.constant 16 : i32
    %64 = vector.broadcast %c16_i32_23 : i32 to vector<32x32xi32>
    %65 = arith.cmpi slt, %63, %64 : vector<32x32xi32>
    %66 = arith.andi %61, %65 : vector<32x32xi1>
    %c2_i32_24 = arith.constant 2 : i32
    %67 = tpu.dynamic_rotate %13 by %c2_i32_24 dim 0 : vector<32x32xf32>, i32 -> vector<32x32xf32>
    %cst_25 = arith.constant 0.000000e+00 : f32
    %68 = vector.broadcast %cst_25 : f32 to vector<32x32xf32>
    %69 = arith.select %39, %67, %68 : vector<32x32xi1>, vector<32x32xf32>
    %c1_i32_26 = arith.constant 1 : i32
    %70 = tpu.dynamic_rotate %13 by %c1_i32_26 dim 0 : vector<32x32xf32>, i32 -> vector<32x32xf32>
    %cst_27 = arith.constant 0.000000e+00 : f32
    %71 = vector.broadcast %cst_27 : f32 to vector<32x32xf32>
    %72 = arith.select %48, %70, %71 : vector<32x32xi1>, vector<32x32xf32>
    %c31_i32 = arith.constant 31 : i32
    %73 = tpu.dynamic_rotate %13 by %c31_i32 dim 0 : vector<32x32xf32>, i32 -> vector<32x32xf32>
    %cst_28 = arith.constant 0.000000e+00 : f32
    %74 = vector.broadcast %cst_28 : f32 to vector<32x32xf32>
    %75 = arith.select %57, %73, %74 : vector<32x32xi1>, vector<32x32xf32>
    %c30_i32 = arith.constant 30 : i32
    %76 = tpu.dynamic_rotate %13 by %c30_i32 dim 0 : vector<32x32xf32>, i32 -> vector<32x32xf32>
    %cst_29 = arith.constant 0.000000e+00 : f32
    %77 = vector.broadcast %cst_29 : f32 to vector<32x32xf32>
    %78 = arith.select %66, %76, %77 : vector<32x32xi1>, vector<32x32xf32>
    %79 = tpu.concatenate %69, %72, %13, %75, %78 in 1 : vector<32x32xf32>, vector<32x32xf32>, vector<32x32xf32>, vector<32x32xf32>, vector<32x32xf32> -> vector<32x160xf32>
    %c0_30 = arith.constant 0 : index
    %c0_31 = arith.constant 0 : index
    %80 = vector.load %arg4[%c0_30, %c0_31] : memref<160x32xf32, #tpu.memory_space<vmem>>, vector<160x32xf32>
    %cst_32 = arith.constant dense<0.000000e+00> : vector<32x32xf32>
    %81 = tpu.matmul %79, %80, %cst_32 {dimension_numbers = #tpu.dot_dimension_numbers<[1], [0], [0], [1], [0, 0, 1, 1], [], []>} : vector<32x160xf32>, vector<160x32xf32>, vector<32x32xf32> -> vector<32x32xf32>
    %c0_33 = arith.constant 0 : index
    %c0_34 = arith.constant 0 : index
    %82 = vector.load %arg5[%c0_33, %c0_34] : memref<1x32xf32, #tpu.memory_space<vmem>>, vector<1x32xf32>
    %83 = vector.broadcast %82 : vector<1x32xf32> to vector<32x32xf32>
    %84 = arith.addf %81, %83 : vector<32x32xf32>
    %cst_35 = arith.constant 0.000000e+00 : f32
    %85 = vector.broadcast %cst_35 : f32 to vector<32x32xf32>
    %86 = arith.maximumf %84, %85 : vector<32x32xf32>
    %c2_i32_36 = arith.constant 2 : i32
    %87 = tpu.dynamic_rotate %86 by %c2_i32_36 dim 0 : vector<32x32xf32>, i32 -> vector<32x32xf32>
    %cst_37 = arith.constant 0.000000e+00 : f32
    %88 = vector.broadcast %cst_37 : f32 to vector<32x32xf32>
    %89 = arith.select %39, %87, %88 : vector<32x32xi1>, vector<32x32xf32>
    %c1_i32_38 = arith.constant 1 : i32
    %90 = tpu.dynamic_rotate %86 by %c1_i32_38 dim 0 : vector<32x32xf32>, i32 -> vector<32x32xf32>
    %cst_39 = arith.constant 0.000000e+00 : f32
    %91 = vector.broadcast %cst_39 : f32 to vector<32x32xf32>
    %92 = arith.select %48, %90, %91 : vector<32x32xi1>, vector<32x32xf32>
    %c31_i32_40 = arith.constant 31 : i32
    %93 = tpu.dynamic_rotate %86 by %c31_i32_40 dim 0 : vector<32x32xf32>, i32 -> vector<32x32xf32>
    %cst_41 = arith.constant 0.000000e+00 : f32
    %94 = vector.broadcast %cst_41 : f32 to vector<32x32xf32>
    %95 = arith.select %57, %93, %94 : vector<32x32xi1>, vector<32x32xf32>
    %c30_i32_42 = arith.constant 30 : i32
    %96 = tpu.dynamic_rotate %86 by %c30_i32_42 dim 0 : vector<32x32xf32>, i32 -> vector<32x32xf32>
    %cst_43 = arith.constant 0.000000e+00 : f32
    %97 = vector.broadcast %cst_43 : f32 to vector<32x32xf32>
    %98 = arith.select %66, %96, %97 : vector<32x32xi1>, vector<32x32xf32>
    %99 = tpu.concatenate %89, %92, %86, %95, %98 in 1 : vector<32x32xf32>, vector<32x32xf32>, vector<32x32xf32>, vector<32x32xf32>, vector<32x32xf32> -> vector<32x160xf32>
    %c0_44 = arith.constant 0 : index
    %c0_45 = arith.constant 0 : index
    %100 = vector.load %arg6[%c0_44, %c0_45] : memref<160x32xf32, #tpu.memory_space<vmem>>, vector<160x32xf32>
    %cst_46 = arith.constant dense<0.000000e+00> : vector<32x32xf32>
    %101 = tpu.matmul %99, %100, %cst_46 {dimension_numbers = #tpu.dot_dimension_numbers<[1], [0], [0], [1], [0, 0, 1, 1], [], []>} : vector<32x160xf32>, vector<160x32xf32>, vector<32x32xf32> -> vector<32x32xf32>
    %c0_47 = arith.constant 0 : index
    %c0_48 = arith.constant 0 : index
    %102 = vector.load %arg7[%c0_47, %c0_48] : memref<1x32xf32, #tpu.memory_space<vmem>>, vector<1x32xf32>
    %103 = vector.broadcast %102 : vector<1x32xf32> to vector<32x32xf32>
    %104 = arith.addf %101, %103 : vector<32x32xf32>
    %105 = arith.addf %13, %104 : vector<32x32xf32>
    %cst_49 = arith.constant 0.000000e+00 : f32
    %106 = vector.broadcast %cst_49 : f32 to vector<32x32xf32>
    %107 = arith.maximumf %105, %106 : vector<32x32xf32>
    %c2_i32_50 = arith.constant 2 : i32
    %108 = tpu.dynamic_rotate %107 by %c2_i32_50 dim 0 : vector<32x32xf32>, i32 -> vector<32x32xf32>
    %cst_51 = arith.constant 0.000000e+00 : f32
    %109 = vector.broadcast %cst_51 : f32 to vector<32x32xf32>
    %110 = arith.select %39, %108, %109 : vector<32x32xi1>, vector<32x32xf32>
    %c1_i32_52 = arith.constant 1 : i32
    %111 = tpu.dynamic_rotate %107 by %c1_i32_52 dim 0 : vector<32x32xf32>, i32 -> vector<32x32xf32>
    %cst_53 = arith.constant 0.000000e+00 : f32
    %112 = vector.broadcast %cst_53 : f32 to vector<32x32xf32>
    %113 = arith.select %48, %111, %112 : vector<32x32xi1>, vector<32x32xf32>
    %c31_i32_54 = arith.constant 31 : i32
    %114 = tpu.dynamic_rotate %107 by %c31_i32_54 dim 0 : vector<32x32xf32>, i32 -> vector<32x32xf32>
    %cst_55 = arith.constant 0.000000e+00 : f32
    %115 = vector.broadcast %cst_55 : f32 to vector<32x32xf32>
    %116 = arith.select %57, %114, %115 : vector<32x32xi1>, vector<32x32xf32>
    %c30_i32_56 = arith.constant 30 : i32
    %117 = tpu.dynamic_rotate %107 by %c30_i32_56 dim 0 : vector<32x32xf32>, i32 -> vector<32x32xf32>
    %cst_57 = arith.constant 0.000000e+00 : f32
    %118 = vector.broadcast %cst_57 : f32 to vector<32x32xf32>
    %119 = arith.select %66, %117, %118 : vector<32x32xi1>, vector<32x32xf32>
    %120 = tpu.concatenate %110, %113, %107, %116, %119 in 1 : vector<32x32xf32>, vector<32x32xf32>, vector<32x32xf32>, vector<32x32xf32>, vector<32x32xf32> -> vector<32x160xf32>
    %c0_58 = arith.constant 0 : index
    %c0_59 = arith.constant 0 : index
    %121 = vector.load %arg8[%c0_58, %c0_59] : memref<160x32xf32, #tpu.memory_space<vmem>>, vector<160x32xf32>
    %cst_60 = arith.constant dense<0.000000e+00> : vector<32x32xf32>
    %122 = tpu.matmul %120, %121, %cst_60 {dimension_numbers = #tpu.dot_dimension_numbers<[1], [0], [0], [1], [0, 0, 1, 1], [], []>} : vector<32x160xf32>, vector<160x32xf32>, vector<32x32xf32> -> vector<32x32xf32>
    %c0_61 = arith.constant 0 : index
    %c0_62 = arith.constant 0 : index
    %123 = vector.load %arg9[%c0_61, %c0_62] : memref<1x32xf32, #tpu.memory_space<vmem>>, vector<1x32xf32>
    %124 = vector.broadcast %123 : vector<1x32xf32> to vector<32x32xf32>
    %125 = arith.addf %122, %124 : vector<32x32xf32>
    %cst_63 = arith.constant 0.000000e+00 : f32
    %126 = vector.broadcast %cst_63 : f32 to vector<32x32xf32>
    %127 = arith.maximumf %125, %126 : vector<32x32xf32>
    %c2_i32_64 = arith.constant 2 : i32
    %128 = tpu.dynamic_rotate %127 by %c2_i32_64 dim 0 : vector<32x32xf32>, i32 -> vector<32x32xf32>
    %cst_65 = arith.constant 0.000000e+00 : f32
    %129 = vector.broadcast %cst_65 : f32 to vector<32x32xf32>
    %130 = arith.select %39, %128, %129 : vector<32x32xi1>, vector<32x32xf32>
    %c1_i32_66 = arith.constant 1 : i32
    %131 = tpu.dynamic_rotate %127 by %c1_i32_66 dim 0 : vector<32x32xf32>, i32 -> vector<32x32xf32>
    %cst_67 = arith.constant 0.000000e+00 : f32
    %132 = vector.broadcast %cst_67 : f32 to vector<32x32xf32>
    %133 = arith.select %48, %131, %132 : vector<32x32xi1>, vector<32x32xf32>
    %c31_i32_68 = arith.constant 31 : i32
    %134 = tpu.dynamic_rotate %127 by %c31_i32_68 dim 0 : vector<32x32xf32>, i32 -> vector<32x32xf32>
    %cst_69 = arith.constant 0.000000e+00 : f32
    %135 = vector.broadcast %cst_69 : f32 to vector<32x32xf32>
    %136 = arith.select %57, %134, %135 : vector<32x32xi1>, vector<32x32xf32>
    %c30_i32_70 = arith.constant 30 : i32
    %137 = tpu.dynamic_rotate %127 by %c30_i32_70 dim 0 : vector<32x32xf32>, i32 -> vector<32x32xf32>
    %cst_71 = arith.constant 0.000000e+00 : f32
    %138 = vector.broadcast %cst_71 : f32 to vector<32x32xf32>
    %139 = arith.select %66, %137, %138 : vector<32x32xi1>, vector<32x32xf32>
    %140 = tpu.concatenate %130, %133, %127, %136, %139 in 1 : vector<32x32xf32>, vector<32x32xf32>, vector<32x32xf32>, vector<32x32xf32>, vector<32x32xf32> -> vector<32x160xf32>
    %c0_72 = arith.constant 0 : index
    %c0_73 = arith.constant 0 : index
    %141 = vector.load %arg10[%c0_72, %c0_73] : memref<160x32xf32, #tpu.memory_space<vmem>>, vector<160x32xf32>
    %cst_74 = arith.constant dense<0.000000e+00> : vector<32x32xf32>
    %142 = tpu.matmul %140, %141, %cst_74 {dimension_numbers = #tpu.dot_dimension_numbers<[1], [0], [0], [1], [0, 0, 1, 1], [], []>} : vector<32x160xf32>, vector<160x32xf32>, vector<32x32xf32> -> vector<32x32xf32>
    %c0_75 = arith.constant 0 : index
    %c0_76 = arith.constant 0 : index
    %143 = vector.load %arg11[%c0_75, %c0_76] : memref<1x32xf32, #tpu.memory_space<vmem>>, vector<1x32xf32>
    %144 = vector.broadcast %143 : vector<1x32xf32> to vector<32x32xf32>
    %145 = arith.addf %142, %144 : vector<32x32xf32>
    %146 = arith.addf %107, %145 : vector<32x32xf32>
    %cst_77 = arith.constant 0.000000e+00 : f32
    %147 = vector.broadcast %cst_77 : f32 to vector<32x32xf32>
    %148 = arith.maximumf %146, %147 : vector<32x32xf32>
    %149 = vector.shape_cast %148 : vector<32x32xf32> to vector<2x512xf32>
    %c0_78 = arith.constant 0 : index
    %c0_79 = arith.constant 0 : index
    %150 = vector.load %arg12[%c0_78, %c0_79] : memref<512x32xf32, #tpu.memory_space<vmem>>, vector<512x32xf32>
    %cst_80 = arith.constant dense<0.000000e+00> : vector<2x32xf32>
    %151 = tpu.matmul %149, %150, %cst_80 {dimension_numbers = #tpu.dot_dimension_numbers<[1], [0], [0], [1], [0, 0, 1, 1], [], []>} : vector<2x512xf32>, vector<512x32xf32>, vector<2x32xf32> -> vector<2x32xf32>
    %c0_81 = arith.constant 0 : index
    %c0_82 = arith.constant 0 : index
    %152 = vector.load %arg13[%c0_81, %c0_82] : memref<1x32xf32, #tpu.memory_space<vmem>>, vector<1x32xf32>
    %153 = vector.broadcast %152 : vector<1x32xf32> to vector<2x32xf32>
    %154 = arith.addf %151, %153 : vector<2x32xf32>
    %c0_83 = arith.constant 0 : index
    %c0_84 = arith.constant 0 : index
    %c0_85 = arith.constant 0 : index
    %155 = vector.load %arg14[%c0_83, %c0_84, %c0_85] : memref<1x2x32xf32, #tpu.memory_space<vmem>>, vector<1x2x32xf32>
    %156 = vector.shape_cast %155 : vector<1x2x32xf32> to vector<2x32xf32>
    %157 = vector.shape_cast %154 : vector<2x32xf32> to vector<1x2x32xf32>
    tpu.vector_store %arg14[%c0_83, %c0_84, %c0_85], %157 {strides = array<i32>} : memref<1x2x32xf32, #tpu.memory_space<vmem>>, vector<1x2x32xf32>,
    return
  }
  func.func @transform_0(%arg0: i32) -> (i32, i32) {
    %c0_i32 = arith.constant 0 : i32
    %c0_i32_0 = arith.constant 0 : i32
    return %arg0, %c0_i32 : i32, i32
  }
  func.func @transform_1(%arg0: i32) -> (i32, i32) {
    %c0_i32 = arith.constant 0 : i32
    %c0_i32_0 = arith.constant 0 : i32
    %c0_i32_1 = arith.constant 0 : i32
    return %c0_i32, %c0_i32_0 : i32, i32
  }
  func.func @transform_2(%arg0: i32) -> (i32, i32) {
    %c0_i32 = arith.constant 0 : i32
    %c0_i32_0 = arith.constant 0 : i32
    %c0_i32_1 = arith.constant 0 : i32
    return %c0_i32, %c0_i32_0 : i32, i32
  }
  func.func @transform_3(%arg0: i32) -> (i32, i32) {
    %c0_i32 = arith.constant 0 : i32
    %c0_i32_0 = arith.constant 0 : i32
    %c0_i32_1 = arith.constant 0 : i32
    return %c0_i32, %c0_i32_0 : i32, i32
  }
  func.func @transform_4(%arg0: i32) -> (i32, i32) {
    %c0_i32 = arith.constant 0 : i32
    %c0_i32_0 = arith.constant 0 : i32
    %c0_i32_1 = arith.constant 0 : i32
    return %c0_i32, %c0_i32_0 : i32, i32
  }
  func.func @transform_5(%arg0: i32) -> (i32, i32) {
    %c0_i32 = arith.constant 0 : i32
    %c0_i32_0 = arith.constant 0 : i32
    %c0_i32_1 = arith.constant 0 : i32
    return %c0_i32, %c0_i32_0 : i32, i32
  }
  func.func @transform_6(%arg0: i32) -> (i32, i32) {
    %c0_i32 = arith.constant 0 : i32
    %c0_i32_0 = arith.constant 0 : i32
    %c0_i32_1 = arith.constant 0 : i32
    return %c0_i32, %c0_i32_0 : i32, i32
  }
  func.func @transform_7(%arg0: i32) -> (i32, i32) {
    %c0_i32 = arith.constant 0 : i32
    %c0_i32_0 = arith.constant 0 : i32
    %c0_i32_1 = arith.constant 0 : i32
    return %c0_i32, %c0_i32_0 : i32, i32
  }
  func.func @transform_8(%arg0: i32) -> (i32, i32) {
    %c0_i32 = arith.constant 0 : i32
    %c0_i32_0 = arith.constant 0 : i32
    %c0_i32_1 = arith.constant 0 : i32
    return %c0_i32, %c0_i32_0 : i32, i32
  }
  func.func @transform_9(%arg0: i32) -> (i32, i32) {
    %c0_i32 = arith.constant 0 : i32
    %c0_i32_0 = arith.constant 0 : i32
    %c0_i32_1 = arith.constant 0 : i32
    return %c0_i32, %c0_i32_0 : i32, i32
  }
  func.func @transform_10(%arg0: i32) -> (i32, i32) {
    %c0_i32 = arith.constant 0 : i32
    %c0_i32_0 = arith.constant 0 : i32
    %c0_i32_1 = arith.constant 0 : i32
    return %c0_i32, %c0_i32_0 : i32, i32
  }
  func.func @transform_11(%arg0: i32) -> (i32, i32) {
    %c0_i32 = arith.constant 0 : i32
    %c0_i32_0 = arith.constant 0 : i32
    %c0_i32_1 = arith.constant 0 : i32
    return %c0_i32, %c0_i32_0 : i32, i32
  }
  func.func @transform_12(%arg0: i32) -> (i32, i32) {
    %c0_i32 = arith.constant 0 : i32
    %c0_i32_0 = arith.constant 0 : i32
    %c0_i32_1 = arith.constant 0 : i32
    return %c0_i32, %c0_i32_0 : i32, i32
  }
  func.func @transform_13(%arg0: i32) -> (i32, i32, i32) {
    %c0_i32 = arith.constant 0 : i32
    %c0_i32_0 = arith.constant 0 : i32
    %c0_i32_1 = arith.constant 0 : i32
    return %arg0, %c0_i32, %c0_i32_0 : i32, i32, i32
  }
}

module attributes {stable_mosaic.version = 11 : i64} {
  func.func @_encoder_kernel(%arg0: i32, %arg1: memref<32x4xf32, #tpu.memory_space<vmem>>, %arg2: memref<4x32xf32, #tpu.memory_space<vmem>>, %arg3: memref<1x32xf32, #tpu.memory_space<vmem>>, %arg4: memref<160x32xf32, #tpu.memory_space<vmem>>, %arg5: memref<1x32xf32, #tpu.memory_space<vmem>>, %arg6: memref<160x32xf32, #tpu.memory_space<vmem>>, %arg7: memref<1x32xf32, #tpu.memory_space<vmem>>, %arg8: memref<160x32xf32, #tpu.memory_space<vmem>>, %arg9: memref<1x32xf32, #tpu.memory_space<vmem>>, %arg10: memref<160x32xf32, #tpu.memory_space<vmem>>, %arg11: memref<1x32xf32, #tpu.memory_space<vmem>>, %arg12: memref<512x32xf32, #tpu.memory_space<vmem>>, %arg13: memref<1x32xf32, #tpu.memory_space<vmem>>, %arg14: memref<1x2x32xf32, #tpu.memory_space<vmem>>) attributes {dimension_semantics = [#tpu.dimension_semantics<parallel>], iteration_bounds = array<i64: 1>, scalar_prefetch = 0 : i64, scratch_operands = 0 : i64, tpu.core_type = #tpu.core_type<tc>, window_params = [{transform_indices = @transform_0, window_bounds = array<i64: 32, 4>}, {pipeline_mode = #tpu.pipeline_mode<synchronous>, transform_indices = @transform_1, window_bounds = array<i64: 4, 32>}, {pipeline_mode = #tpu.pipeline_mode<synchronous>, transform_indices = @transform_2, window_bounds = array<i64: 1, 32>}, {pipeline_mode = #tpu.pipeline_mode<synchronous>, transform_indices = @transform_3, window_bounds = array<i64: 160, 32>}, {pipeline_mode = #tpu.pipeline_mode<synchronous>, transform_indices = @transform_4, window_bounds = array<i64: 1, 32>}, {pipeline_mode = #tpu.pipeline_mode<synchronous>, transform_indices = @transform_5, window_bounds = array<i64: 160, 32>}, {pipeline_mode = #tpu.pipeline_mode<synchronous>, transform_indices = @transform_6, window_bounds = array<i64: 1, 32>}, {pipeline_mode = #tpu.pipeline_mode<synchronous>, transform_indices = @transform_7, window_bounds = array<i64: 160, 32>}, {pipeline_mode = #tpu.pipeline_mode<synchronous>, transform_indices = @transform_8, window_bounds = array<i64: 1, 32>}, {pipeline_mode = #tpu.pipeline_mode<synchronous>, transform_indices = @transform_9, window_bounds = array<i64: 160, 32>}, {pipeline_mode = #tpu.pipeline_mode<synchronous>, transform_indices = @transform_10, window_bounds = array<i64: 1, 32>}, {pipeline_mode = #tpu.pipeline_mode<synchronous>, transform_indices = @transform_11, window_bounds = array<i64: 512, 32>}, {pipeline_mode = #tpu.pipeline_mode<synchronous>, transform_indices = @transform_12, window_bounds = array<i64: 1, 32>}, {transform_indices = @transform_13, window_bounds = array<i64: 1, 2, 32>}]} {
    %c0 = arith.constant 0 : index
    %c0_0 = arith.constant 0 : index
    %0 = vector.load %arg1[%c0, %c0_0] : memref<32x4xf32, #tpu.memory_space<vmem>>, vector<32x4xf32>
    %c0_1 = arith.constant 0 : index
    %c0_2 = arith.constant 0 : index
    %1 = vector.load %arg2[%c0_1, %c0_2] : memref<4x32xf32, #tpu.memory_space<vmem>>, vector<4x32xf32>
    %cst = arith.constant dense<0.000000e+00> : vector<32x32xf32>
    %2 = tpu.matmul %0, %1, %cst {dimension_numbers = #tpu.dot_dimension_numbers<[1], [0], [0], [1], [0, 0, 1, 1], [], []>} : vector<32x4xf32>, vector<4x32xf32>, vector<32x32xf32> -> vector<32x32xf32>
    %c0_3 = arith.constant 0 : index
    %c0_4 = arith.constant 0 : index
    %3 = vector.load %arg3[%c0_3, %c0_4] : memref<1x32xf32, #tpu.memory_space<vmem>>, vector<1x32xf32>
    %4 = vector.broadcast %3 : vector<1x32xf32> to vector<32x32xf32>
    %5 = arith.addf %2, %4 : vector<32x32xf32>
    %cst_5 = arith.constant 0.000000e+00 : f32
    %6 = vector.broadcast %cst_5 : f32 to vector<32x32xf32>
    %7 = arith.cmpf ogt, %5, %6 : vector<32x32xf32>
    %cst_6 = arith.constant 0.000000e+00 : f32
    %8 = vector.broadcast %cst_6 : f32 to vector<32x32xf32>
    %9 = arith.minimumf %5, %8 : vector<32x32xf32>
    %10 = math.exp %9 : vector<32x32xf32>
    %cst_7 = arith.constant 1.000000e+00 : f32
    %11 = vector.broadcast %cst_7 : f32 to vector<32x32xf32>
    %12 = arith.subf %10, %11 : vector<32x32xf32>
    %13 = arith.select %7, %5, %12 : vector<32x32xi1>, vector<32x32xf32>
    %14 = tpu.iota {dimensions = array<i32: 0>} : vector<32x32xi32>
    %c16_i32 = arith.constant 16 : i32
    %c0_i32 = arith.constant 0 : i32
    %15 = arith.cmpi eq, %c16_i32, %c0_i32 : i32
    %c1_i32 = arith.constant 1 : i32
    %16 = arith.select %15, %c1_i32, %c16_i32 : i32
    %17 = vector.broadcast %16 : i32 to vector<32x32xi32>
    %18 = arith.remsi %14, %17 : vector<32x32xi32>
    %c0_i32_8 = arith.constant 0 : i32
    %19 = vector.broadcast %c0_i32_8 : i32 to vector<32x32xi32>
    %20 = arith.cmpi ne, %18, %19 : vector<32x32xi32>
    %c0_i32_9 = arith.constant 0 : i32
    %21 = vector.broadcast %c0_i32_9 : i32 to vector<32x32xi32>
    %22 = arith.cmpi slt, %18, %21 : vector<32x32xi32>
    %c0_i32_10 = arith.constant 0 : i32
    %23 = arith.cmpi slt, %16, %c0_i32_10 : i32
    %24 = vector.broadcast %23 : i1 to vector<32x32xi1>
    %25 = vector.broadcast %24 : vector<32x32xi1> to vector<32x32xi1>
    %26 = arith.xori %22, %25 : vector<32x32xi1>
    %27 = arith.andi %26, %20 : vector<32x32xi1>
    %28 = vector.broadcast %16 : i32 to vector<32x32xi32>
    %29 = arith.addi %18, %28 : vector<32x32xi32>
    %30 = arith.select %27, %29, %18 : vector<32x32xi1>, vector<32x32xi32>
    %c-2_i32 = arith.constant -2 : i32
    %31 = vector.broadcast %c-2_i32 : i32 to vector<32x32xi32>
    %32 = arith.addi %30, %31 : vector<32x32xi32>
    %c0_i32_11 = arith.constant 0 : i32
    %33 = vector.broadcast %c0_i32_11 : i32 to vector<32x32xi32>
    %34 = arith.cmpi sge, %32, %33 : vector<32x32xi32>
    %c-2_i32_12 = arith.constant -2 : i32
    %35 = vector.broadcast %c-2_i32_12 : i32 to vector<32x32xi32>
    %36 = arith.addi %30, %35 : vector<32x32xi32>
    %c16_i32_13 = arith.constant 16 : i32
    %37 = vector.broadcast %c16_i32_13 : i32 to vector<32x32xi32>
    %38 = arith.cmpi slt, %36, %37 : vector<32x32xi32>
    %39 = arith.andi %34, %38 : vector<32x32xi1>
    %c-1_i32 = arith.constant -1 : i32
    %40 = vector.broadcast %c-1_i32 : i32 to vector<32x32xi32>
    %41 = arith.addi %30, %40 : vector<32x32xi32>
    %c0_i32_14 = arith.constant 0 : i32
    %42 = vector.broadcast %c0_i32_14 : i32 to vector<32x32xi32>
    %43 = arith.cmpi sge, %41, %42 : vector<32x32xi32>
    %c-1_i32_15 = arith.constant -1 : i32
    %44 = vector.broadcast %c-1_i32_15 : i32 to vector<32x32xi32>
    %45 = arith.addi %30, %44 : vector<32x32xi32>
    %c16_i32_16 = arith.constant 16 : i32
    %46 = vector.broadcast %c16_i32_16 : i32 to vector<32x32xi32>
    %47 = arith.cmpi slt, %45, %46 : vector<32x32xi32>
    %48 = arith.andi %43, %47 : vector<32x32xi1>
    %c1_i32_17 = arith.constant 1 : i32
    %49 = vector.broadcast %c1_i32_17 : i32 to vector<32x32xi32>
    %50 = arith.addi %30, %49 : vector<32x32xi32>
    %c0_i32_18 = arith.constant 0 : i32
    %51 = vector.broadcast %c0_i32_18 : i32 to vector<32x32xi32>
    %52 = arith.cmpi sge, %50, %51 : vector<32x32xi32>
    %c1_i32_19 = arith.constant 1 : i32
    %53 = vector.broadcast %c1_i32_19 : i32 to vector<32x32xi32>
    %54 = arith.addi %30, %53 : vector<32x32xi32>
    %c16_i32_20 = arith.constant 16 : i32
    %55 = vector.broadcast %c16_i32_20 : i32 to vector<32x32xi32>
    %56 = arith.cmpi slt, %54, %55 : vector<32x32xi32>
    %57 = arith.andi %52, %56 : vector<32x32xi1>
    %c2_i32 = arith.constant 2 : i32
    %58 = vector.broadcast %c2_i32 : i32 to vector<32x32xi32>
    %59 = arith.addi %30, %58 : vector<32x32xi32>
    %c0_i32_21 = arith.constant 0 : i32
    %60 = vector.broadcast %c0_i32_21 : i32 to vector<32x32xi32>
    %61 = arith.cmpi sge, %59, %60 : vector<32x32xi32>
    %c2_i32_22 = arith.constant 2 : i32
    %62 = vector.broadcast %c2_i32_22 : i32 to vector<32x32xi32>
    %63 = arith.addi %30, %62 : vector<32x32xi32>
    %c16_i32_23 = arith.constant 16 : i32
    %64 = vector.broadcast %c16_i32_23 : i32 to vector<32x32xi32>
    %65 = arith.cmpi slt, %63, %64 : vector<32x32xi32>
    %66 = arith.andi %61, %65 : vector<32x32xi1>
    %c2_i32_24 = arith.constant 2 : i32
    %67 = tpu.dynamic_rotate %13 by %c2_i32_24 dim 0 : vector<32x32xf32>, i32 -> vector<32x32xf32>
    %cst_25 = arith.constant 0.000000e+00 : f32
    %68 = vector.broadcast %cst_25 : f32 to vector<32x32xf32>
    %69 = arith.select %39, %67, %68 : vector<32x32xi1>, vector<32x32xf32>
    %c1_i32_26 = arith.constant 1 : i32
    %70 = tpu.dynamic_rotate %13 by %c1_i32_26 dim 0 : vector<32x32xf32>, i32 -> vector<32x32xf32>
    %cst_27 = arith.constant 0.000000e+00 : f32
    %71 = vector.broadcast %cst_27 : f32 to vector<32x32xf32>
    %72 = arith.select %48, %70, %71 : vector<32x32xi1>, vector<32x32xf32>
    %c31_i32 = arith.constant 31 : i32
    %73 = tpu.dynamic_rotate %13 by %c31_i32 dim 0 : vector<32x32xf32>, i32 -> vector<32x32xf32>
    %cst_28 = arith.constant 0.000000e+00 : f32
    %74 = vector.broadcast %cst_28 : f32 to vector<32x32xf32>
    %75 = arith.select %57, %73, %74 : vector<32x32xi1>, vector<32x32xf32>
    %c30_i32 = arith.constant 30 : i32
    %76 = tpu.dynamic_rotate %13 by %c30_i32 dim 0 : vector<32x32xf32>, i32 -> vector<32x32xf32>
    %cst_29 = arith.constant 0.000000e+00 : f32
    %77 = vector.broadcast %cst_29 : f32 to vector<32x32xf32>
    %78 = arith.select %66, %76, %77 : vector<32x32xi1>, vector<32x32xf32>
    %79 = tpu.concatenate %69, %72, %13, %75, %78 in 1 : vector<32x32xf32>, vector<32x32xf32>, vector<32x32xf32>, vector<32x32xf32>, vector<32x32xf32> -> vector<32x160xf32>
    %c0_30 = arith.constant 0 : index
    %c0_31 = arith.constant 0 : index
    %80 = vector.load %arg4[%c0_30, %c0_31] : memref<160x32xf32, #tpu.memory_space<vmem>>, vector<160x32xf32>
    %cst_32 = arith.constant dense<0.000000e+00> : vector<32x32xf32>
    %81 = tpu.matmul %79, %80, %cst_32 {dimension_numbers = #tpu.dot_dimension_numbers<[1], [0], [0], [1], [0, 0, 1, 1], [], []>} : vector<32x160xf32>, vector<160x32xf32>, vector<32x32xf32> -> vector<32x32xf32>
    %c0_33 = arith.constant 0 : index
    %c0_34 = arith.constant 0 : index
    %82 = vector.load %arg5[%c0_33, %c0_34] : memref<1x32xf32, #tpu.memory_space<vmem>>, vector<1x32xf32>
    %83 = vector.broadcast %82 : vector<1x32xf32> to vector<32x32xf32>
    %84 = arith.addf %81, %83 : vector<32x32xf32>
    %cst_35 = arith.constant 0.000000e+00 : f32
    %85 = vector.broadcast %cst_35 : f32 to vector<32x32xf32>
    %86 = arith.maximumf %84, %85 : vector<32x32xf32>
    %c2_i32_36 = arith.constant 2 : i32
    %87 = tpu.dynamic_rotate %86 by %c2_i32_36 dim 0 : vector<32x32xf32>, i32 -> vector<32x32xf32>
    %cst_37 = arith.constant 0.000000e+00 : f32
    %88 = vector.broadcast %cst_37 : f32 to vector<32x32xf32>
    %89 = arith.select %39, %87, %88 : vector<32x32xi1>, vector<32x32xf32>
    %c1_i32_38 = arith.constant 1 : i32
    %90 = tpu.dynamic_rotate %86 by %c1_i32_38 dim 0 : vector<32x32xf32>, i32 -> vector<32x32xf32>
    %cst_39 = arith.constant 0.000000e+00 : f32
    %91 = vector.broadcast %cst_39 : f32 to vector<32x32xf32>
    %92 = arith.select %48, %90, %91 : vector<32x32xi1>, vector<32x32xf32>
    %c31_i32_40 = arith.constant 31 : i32
    %93 = tpu.dynamic_rotate %86 by %c31_i32_40 dim 0 : vector<32x32xf32>, i32 -> vector<32x32xf32>
    %cst_41 = arith.constant 0.000000e+00 : f32
    %94 = vector.broadcast %cst_41 : f32 to vector<32x32xf32>
    %95 = arith.select %57, %93, %94 : vector<32x32xi1>, vector<32x32xf32>
    %c30_i32_42 = arith.constant 30 : i32
    %96 = tpu.dynamic_rotate %86 by %c30_i32_42 dim 0 : vector<32x32xf32>, i32 -> vector<32x32xf32>
    %cst_43 = arith.constant 0.000000e+00 : f32
    %97 = vector.broadcast %cst_43 : f32 to vector<32x32xf32>
    %98 = arith.select %66, %96, %97 : vector<32x32xi1>, vector<32x32xf32>
    %99 = tpu.concatenate %89, %92, %86, %95, %98 in 1 : vector<32x32xf32>, vector<32x32xf32>, vector<32x32xf32>, vector<32x32xf32>, vector<32x32xf32> -> vector<32x160xf32>
    %c0_44 = arith.constant 0 : index
    %c0_45 = arith.constant 0 : index
    %100 = vector.load %arg6[%c0_44, %c0_45] : memref<160x32xf32, #tpu.memory_space<vmem>>, vector<160x32xf32>
    %cst_46 = arith.constant dense<0.000000e+00> : vector<32x32xf32>
    %101 = tpu.matmul %99, %100, %cst_46 {dimension_numbers = #tpu.dot_dimension_numbers<[1], [0], [0], [1], [0, 0, 1, 1], [], []>} : vector<32x160xf32>, vector<160x32xf32>, vector<32x32xf32> -> vector<32x32xf32>
    %c0_47 = arith.constant 0 : index
    %c0_48 = arith.constant 0 : index
    %102 = vector.load %arg7[%c0_47, %c0_48] : memref<1x32xf32, #tpu.memory_space<vmem>>, vector<1x32xf32>
    %103 = vector.broadcast %102 : vector<1x32xf32> to vector<32x32xf32>
    %104 = arith.addf %101, %103 : vector<32x32xf32>
    %105 = arith.addf %13, %104 : vector<32x32xf32>
    %cst_49 = arith.constant 0.000000e+00 : f32
    %106 = vector.broadcast %cst_49 : f32 to vector<32x32xf32>
    %107 = arith.maximumf %105, %106 : vector<32x32xf32>
    %c2_i32_50 = arith.constant 2 : i32
    %108 = tpu.dynamic_rotate %107 by %c2_i32_50 dim 0 : vector<32x32xf32>, i32 -> vector<32x32xf32>
    %cst_51 = arith.constant 0.000000e+00 : f32
    %109 = vector.broadcast %cst_51 : f32 to vector<32x32xf32>
    %110 = arith.select %39, %108, %109 : vector<32x32xi1>, vector<32x32xf32>
    %c1_i32_52 = arith.constant 1 : i32
    %111 = tpu.dynamic_rotate %107 by %c1_i32_52 dim 0 : vector<32x32xf32>, i32 -> vector<32x32xf32>
    %cst_53 = arith.constant 0.000000e+00 : f32
    %112 = vector.broadcast %cst_53 : f32 to vector<32x32xf32>
    %113 = arith.select %48, %111, %112 : vector<32x32xi1>, vector<32x32xf32>
    %c31_i32_54 = arith.constant 31 : i32
    %114 = tpu.dynamic_rotate %107 by %c31_i32_54 dim 0 : vector<32x32xf32>, i32 -> vector<32x32xf32>
    %cst_55 = arith.constant 0.000000e+00 : f32
    %115 = vector.broadcast %cst_55 : f32 to vector<32x32xf32>
    %116 = arith.select %57, %114, %115 : vector<32x32xi1>, vector<32x32xf32>
    %c30_i32_56 = arith.constant 30 : i32
    %117 = tpu.dynamic_rotate %107 by %c30_i32_56 dim 0 : vector<32x32xf32>, i32 -> vector<32x32xf32>
    %cst_57 = arith.constant 0.000000e+00 : f32
    %118 = vector.broadcast %cst_57 : f32 to vector<32x32xf32>
    %119 = arith.select %66, %117, %118 : vector<32x32xi1>, vector<32x32xf32>
    %120 = tpu.concatenate %110, %113, %107, %116, %119 in 1 : vector<32x32xf32>, vector<32x32xf32>, vector<32x32xf32>, vector<32x32xf32>, vector<32x32xf32> -> vector<32x160xf32>
    %c0_58 = arith.constant 0 : index
    %c0_59 = arith.constant 0 : index
    %121 = vector.load %arg8[%c0_58, %c0_59] : memref<160x32xf32, #tpu.memory_space<vmem>>, vector<160x32xf32>
    %cst_60 = arith.constant dense<0.000000e+00> : vector<32x32xf32>
    %122 = tpu.matmul %120, %121, %cst_60 {dimension_numbers = #tpu.dot_dimension_numbers<[1], [0], [0], [1], [0, 0, 1, 1], [], []>} : vector<32x160xf32>, vector<160x32xf32>, vector<32x32xf32> -> vector<32x32xf32>
    %c0_61 = arith.constant 0 : index
    %c0_62 = arith.constant 0 : index
    %123 = vector.load %arg9[%c0_61, %c0_62] : memref<1x32xf32, #tpu.memory_space<vmem>>, vector<1x32xf32>
    %124 = vector.broadcast %123 : vector<1x32xf32> to vector<32x32xf32>
    %125 = arith.addf %122, %124 : vector<32x32xf32>
    %cst_63 = arith.constant 0.000000e+00 : f32
    %126 = vector.broadcast %cst_63 : f32 to vector<32x32xf32>
    %127 = arith.maximumf %125, %126 : vector<32x32xf32>
    %c2_i32_64 = arith.constant 2 : i32
    %128 = tpu.dynamic_rotate %127 by %c2_i32_64 dim 0 : vector<32x32xf32>, i32 -> vector<32x32xf32>
    %cst_65 = arith.constant 0.000000e+00 : f32
    %129 = vector.broadcast %cst_65 : f32 to vector<32x32xf32>
    %130 = arith.select %39, %128, %129 : vector<32x32xi1>, vector<32x32xf32>
    %c1_i32_66 = arith.constant 1 : i32
    %131 = tpu.dynamic_rotate %127 by %c1_i32_66 dim 0 : vector<32x32xf32>, i32 -> vector<32x32xf32>
    %cst_67 = arith.constant 0.000000e+00 : f32
    %132 = vector.broadcast %cst_67 : f32 to vector<32x32xf32>
    %133 = arith.select %48, %131, %132 : vector<32x32xi1>, vector<32x32xf32>
    %c31_i32_68 = arith.constant 31 : i32
    %134 = tpu.dynamic_rotate %127 by %c31_i32_68 dim 0 : vector<32x32xf32>, i32 -> vector<32x32xf32>
    %cst_69 = arith.constant 0.000000e+00 : f32
    %135 = vector.broadcast %cst_69 : f32 to vector<32x32xf32>
    %136 = arith.select %57, %134, %135 : vector<32x32xi1>, vector<32x32xf32>
    %c30_i32_70 = arith.constant 30 : i32
    %137 = tpu.dynamic_rotate %127 by %c30_i32_70 dim 0 : vector<32x32xf32>, i32 -> vector<32x32xf32>
    %cst_71 = arith.constant 0.000000e+00 : f32
    %138 = vector.broadcast %cst_71 : f32 to vector<32x32xf32>
    %139 = arith.select %66, %137, %138 : vector<32x32xi1>, vector<32x32xf32>
    %140 = tpu.concatenate %130, %133, %127, %136, %139 in 1 : vector<32x32xf32>, vector<32x32xf32>, vector<32x32xf32>, vector<32x32xf32>, vector<32x32xf32> -> vector<32x160xf32>
    %c0_72 = arith.constant 0 : index
    %c0_73 = arith.constant 0 : index
    %141 = vector.load %arg10[%c0_72, %c0_73] : memref<160x32xf32, #tpu.memory_space<vmem>>, vector<160x32xf32>
    %cst_74 = arith.constant dense<0.000000e+00> : vector<32x32xf32>
    %142 = tpu.matmul %140, %141, %cst_74 {dimension_numbers = #tpu.dot_dimension_numbers<[1], [0], [0], [1], [0, 0, 1, 1], [], []>} : vector<32x160xf32>, vector<160x32xf32>, vector<32x32xf32> -> vector<32x32xf32>
    %c0_75 = arith.constant 0 : index
    %c0_76 = arith.constant 0 : index
    %143 = vector.load %arg11[%c0_75, %c0_76] : memref<1x32xf32, #tpu.memory_space<vmem>>, vector<1x32xf32>
    %144 = vector.broadcast %143 : vector<1x32xf32> to vector<32x32xf32>
    %145 = arith.addf %142, %144 : vector<32x32xf32>
    %146 = arith.addf %107, %145 : vector<32x32xf32>
    %cst_77 = arith.constant 0.000000e+00 : f32
    %147 = vector.broadcast %cst_77 : f32 to vector<32x32xf32>
    %148 = arith.maximumf %146, %147 : vector<32x32xf32>
    %149 = vector.shape_cast %148 : vector<32x32xf32> to vector<2x16x32xf32>
    %150 = vector.extract_strided_slice %149 {offsets = [0, 0, 0], sizes = [2, 1, 32], strides = [1, 1, 1]} : vector<2x16x32xf32> to vector<2x1x32xf32>
    %151 = vector.shape_cast %150 : vector<2x1x32xf32> to vector<2x32xf32>
    %152 = vector.extract_strided_slice %149 {offsets = [0, 1, 0], sizes = [2, 1, 32], strides = [1, 1, 1]} : vector<2x16x32xf32> to vector<2x1x32xf32>
    %153 = vector.shape_cast %152 : vector<2x1x32xf32> to vector<2x32xf32>
    %154 = vector.extract_strided_slice %149 {offsets = [0, 2, 0], sizes = [2, 1, 32], strides = [1, 1, 1]} : vector<2x16x32xf32> to vector<2x1x32xf32>
    %155 = vector.shape_cast %154 : vector<2x1x32xf32> to vector<2x32xf32>
    %156 = vector.extract_strided_slice %149 {offsets = [0, 3, 0], sizes = [2, 1, 32], strides = [1, 1, 1]} : vector<2x16x32xf32> to vector<2x1x32xf32>
    %157 = vector.shape_cast %156 : vector<2x1x32xf32> to vector<2x32xf32>
    %158 = vector.extract_strided_slice %149 {offsets = [0, 4, 0], sizes = [2, 1, 32], strides = [1, 1, 1]} : vector<2x16x32xf32> to vector<2x1x32xf32>
    %159 = vector.shape_cast %158 : vector<2x1x32xf32> to vector<2x32xf32>
    %160 = vector.extract_strided_slice %149 {offsets = [0, 5, 0], sizes = [2, 1, 32], strides = [1, 1, 1]} : vector<2x16x32xf32> to vector<2x1x32xf32>
    %161 = vector.shape_cast %160 : vector<2x1x32xf32> to vector<2x32xf32>
    %162 = vector.extract_strided_slice %149 {offsets = [0, 6, 0], sizes = [2, 1, 32], strides = [1, 1, 1]} : vector<2x16x32xf32> to vector<2x1x32xf32>
    %163 = vector.shape_cast %162 : vector<2x1x32xf32> to vector<2x32xf32>
    %164 = vector.extract_strided_slice %149 {offsets = [0, 7, 0], sizes = [2, 1, 32], strides = [1, 1, 1]} : vector<2x16x32xf32> to vector<2x1x32xf32>
    %165 = vector.shape_cast %164 : vector<2x1x32xf32> to vector<2x32xf32>
    %166 = vector.extract_strided_slice %149 {offsets = [0, 8, 0], sizes = [2, 1, 32], strides = [1, 1, 1]} : vector<2x16x32xf32> to vector<2x1x32xf32>
    %167 = vector.shape_cast %166 : vector<2x1x32xf32> to vector<2x32xf32>
    %168 = vector.extract_strided_slice %149 {offsets = [0, 9, 0], sizes = [2, 1, 32], strides = [1, 1, 1]} : vector<2x16x32xf32> to vector<2x1x32xf32>
    %169 = vector.shape_cast %168 : vector<2x1x32xf32> to vector<2x32xf32>
    %170 = vector.extract_strided_slice %149 {offsets = [0, 10, 0], sizes = [2, 1, 32], strides = [1, 1, 1]} : vector<2x16x32xf32> to vector<2x1x32xf32>
    %171 = vector.shape_cast %170 : vector<2x1x32xf32> to vector<2x32xf32>
    %172 = vector.extract_strided_slice %149 {offsets = [0, 11, 0], sizes = [2, 1, 32], strides = [1, 1, 1]} : vector<2x16x32xf32> to vector<2x1x32xf32>
    %173 = vector.shape_cast %172 : vector<2x1x32xf32> to vector<2x32xf32>
    %174 = vector.extract_strided_slice %149 {offsets = [0, 12, 0], sizes = [2, 1, 32], strides = [1, 1, 1]} : vector<2x16x32xf32> to vector<2x1x32xf32>
    %175 = vector.shape_cast %174 : vector<2x1x32xf32> to vector<2x32xf32>
    %176 = vector.extract_strided_slice %149 {offsets = [0, 13, 0], sizes = [2, 1, 32], strides = [1, 1, 1]} : vector<2x16x32xf32> to vector<2x1x32xf32>
    %177 = vector.shape_cast %176 : vector<2x1x32xf32> to vector<2x32xf32>
    %178 = vector.extract_strided_slice %149 {offsets = [0, 14, 0], sizes = [2, 1, 32], strides = [1, 1, 1]} : vector<2x16x32xf32> to vector<2x1x32xf32>
    %179 = vector.shape_cast %178 : vector<2x1x32xf32> to vector<2x32xf32>
    %180 = vector.extract_strided_slice %149 {offsets = [0, 15, 0], sizes = [2, 1, 32], strides = [1, 1, 1]} : vector<2x16x32xf32> to vector<2x1x32xf32>
    %181 = vector.shape_cast %180 : vector<2x1x32xf32> to vector<2x32xf32>
    %182 = tpu.concatenate %151, %153, %155, %157, %159, %161, %163, %165, %167, %169, %171, %173, %175, %177, %179, %181 in 1 : vector<2x32xf32>, vector<2x32xf32>, vector<2x32xf32>, vector<2x32xf32>, vector<2x32xf32>, vector<2x32xf32>, vector<2x32xf32>, vector<2x32xf32>, vector<2x32xf32>, vector<2x32xf32>, vector<2x32xf32>, vector<2x32xf32>, vector<2x32xf32>, vector<2x32xf32>, vector<2x32xf32>, vector<2x32xf32> -> vector<2x512xf32>
    %c0_78 = arith.constant 0 : index
    %c0_79 = arith.constant 0 : index
    %183 = vector.load %arg12[%c0_78, %c0_79] : memref<512x32xf32, #tpu.memory_space<vmem>>, vector<512x32xf32>
    %cst_80 = arith.constant dense<0.000000e+00> : vector<2x32xf32>
    %184 = tpu.matmul %182, %183, %cst_80 {dimension_numbers = #tpu.dot_dimension_numbers<[1], [0], [0], [1], [0, 0, 1, 1], [], []>} : vector<2x512xf32>, vector<512x32xf32>, vector<2x32xf32> -> vector<2x32xf32>
    %c0_81 = arith.constant 0 : index
    %c0_82 = arith.constant 0 : index
    %185 = vector.load %arg13[%c0_81, %c0_82] : memref<1x32xf32, #tpu.memory_space<vmem>>, vector<1x32xf32>
    %186 = vector.broadcast %185 : vector<1x32xf32> to vector<2x32xf32>
    %187 = arith.addf %184, %186 : vector<2x32xf32>
    %c0_83 = arith.constant 0 : index
    %c0_84 = arith.constant 0 : index
    %c0_85 = arith.constant 0 : index
    %188 = vector.load %arg14[%c0_83, %c0_84, %c0_85] : memref<1x2x32xf32, #tpu.memory_space<vmem>>, vector<1x2x32xf32>
    %189 = vector.shape_cast %188 : vector<1x2x32xf32> to vector<2x32xf32>
    %190 = vector.shape_cast %187 : vector<2x32xf32> to vector<1x2x32xf32>
    tpu.vector_store %arg14[%c0_83, %c0_84, %c0_85], %190 {strides = array<i32>} : memref<1x2x32xf32, #tpu.memory_space<vmem>>, vector<1x2x32xf32>,
    return
  }
  func.func @transform_0(%arg0: i32) -> (i32, i32) {
    %c0_i32 = arith.constant 0 : i32
    %c0_i32_0 = arith.constant 0 : i32
    return %arg0, %c0_i32 : i32, i32
  }
  func.func @transform_1(%arg0: i32) -> (i32, i32) {
    %c0_i32 = arith.constant 0 : i32
    %c0_i32_0 = arith.constant 0 : i32
    %c0_i32_1 = arith.constant 0 : i32
    return %c0_i32, %c0_i32_0 : i32, i32
  }
  func.func @transform_2(%arg0: i32) -> (i32, i32) {
    %c0_i32 = arith.constant 0 : i32
    %c0_i32_0 = arith.constant 0 : i32
    %c0_i32_1 = arith.constant 0 : i32
    return %c0_i32, %c0_i32_0 : i32, i32
  }
  func.func @transform_3(%arg0: i32) -> (i32, i32) {
    %c0_i32 = arith.constant 0 : i32
    %c0_i32_0 = arith.constant 0 : i32
    %c0_i32_1 = arith.constant 0 : i32
    return %c0_i32, %c0_i32_0 : i32, i32
  }
  func.func @transform_4(%arg0: i32) -> (i32, i32) {
    %c0_i32 = arith.constant 0 : i32
    %c0_i32_0 = arith.constant 0 : i32
    %c0_i32_1 = arith.constant 0 : i32
    return %c0_i32, %c0_i32_0 : i32, i32
  }
  func.func @transform_5(%arg0: i32) -> (i32, i32) {
    %c0_i32 = arith.constant 0 : i32
    %c0_i32_0 = arith.constant 0 : i32
    %c0_i32_1 = arith.constant 0 : i32
    return %c0_i32, %c0_i32_0 : i32, i32
  }
  func.func @transform_6(%arg0: i32) -> (i32, i32) {
    %c0_i32 = arith.constant 0 : i32
    %c0_i32_0 = arith.constant 0 : i32
    %c0_i32_1 = arith.constant 0 : i32
    return %c0_i32, %c0_i32_0 : i32, i32
  }
  func.func @transform_7(%arg0: i32) -> (i32, i32) {
    %c0_i32 = arith.constant 0 : i32
    %c0_i32_0 = arith.constant 0 : i32
    %c0_i32_1 = arith.constant 0 : i32
    return %c0_i32, %c0_i32_0 : i32, i32
  }
  func.func @transform_8(%arg0: i32) -> (i32, i32) {
    %c0_i32 = arith.constant 0 : i32
    %c0_i32_0 = arith.constant 0 : i32
    %c0_i32_1 = arith.constant 0 : i32
    return %c0_i32, %c0_i32_0 : i32, i32
  }
  func.func @transform_9(%arg0: i32) -> (i32, i32) {
    %c0_i32 = arith.constant 0 : i32
    %c0_i32_0 = arith.constant 0 : i32
    %c0_i32_1 = arith.constant 0 : i32
    return %c0_i32, %c0_i32_0 : i32, i32
  }
  func.func @transform_10(%arg0: i32) -> (i32, i32) {
    %c0_i32 = arith.constant 0 : i32
    %c0_i32_0 = arith.constant 0 : i32
    %c0_i32_1 = arith.constant 0 : i32
    return %c0_i32, %c0_i32_0 : i32, i32
  }
  func.func @transform_11(%arg0: i32) -> (i32, i32) {
    %c0_i32 = arith.constant 0 : i32
    %c0_i32_0 = arith.constant 0 : i32
    %c0_i32_1 = arith.constant 0 : i32
    return %c0_i32, %c0_i32_0 : i32, i32
  }
  func.func @transform_12(%arg0: i32) -> (i32, i32) {
    %c0_i32 = arith.constant 0 : i32
    %c0_i32_0 = arith.constant 0 : i32
    %c0_i32_1 = arith.constant 0 : i32
    return %c0_i32, %c0_i32_0 : i32, i32
  }
  func.func @transform_13(%arg0: i32) -> (i32, i32, i32) {
    %c0_i32 = arith.constant 0 : i32
    %c0_i32_0 = arith.constant 0 : i32
    %c0_i32_1 = arith.constant 0 : i32
    return %arg0, %c0_i32, %c0_i32_0 : i32, i32, i32
  }
}

</mosaic_0001>

<bundles_post_ra>
// kernel: tpu_custom_call.1
= control target key start
LH: loop header
LB: loop body
LE: loop exit
PB: predicated region body
PF: predicated region fallthrough
CT: control target
= control target key end

     0   :  { %vm70_vm0 = vcmask 1043456   ;;  %vm57_vm1 = vcmask 31744   ;;  %s2972_s0 = inlined_call_operand.vmem [shape: f32[32,4], index: 0, kind: input, shape index: {}]   ;;  %s2973_s1 = inlined_call_operand.vmem [shape: f32[4,32], index: 1, kind: input, shape index: {}]   ;;  %s2974_s2 = inlined_call_operand.vmem [shape: f32[1,32], index: 2, kind: input, shape index: {}]   ;;  %s2975_s3 = inlined_call_operand.vmem [shape: f32[160,32], index: 3, kind: input, shape index: {}]   ;;  %s2976_s4 = inlined_call_operand.vmem [shape: f32[1,32], index: 4, kind: input, shape index: {}]   ;;  %s2977_s5 = inlined_call_operand.vmem [shape: f32[160,32], index: 5, kind: input, shape index: {}]   ;;  %s2978_s6 = inlined_call_operand.vmem [shape: f32[1,32], index: 6, kind: input, shape index: {}]   ;;  %s2979_s7 = inlined_call_operand.vmem [shape: f32[160,32], index: 7, kind: input, shape index: {}]   ;;  %s2980_s8 = inlined_call_operand.vmem [shape: f32[1,32], index: 8, kind: input, shape index: {}]   ;;  %s2981_s9 = inlined_call_operand.vmem [shape: f32[160,32], index: 9, kind: input, shape index: {}]   ;;  %s2982_s10 = inlined_call_operand.vmem [shape: f32[1,32], index: 10, kind: input, shape index: {}]   ;;  %s2983_s11 = inlined_call_operand.vmem [shape: f32[512,32], index: 11, kind: input, shape index: {}]   ;;  %s2984_s12 = inlined_call_operand.vmem [shape: f32[1,32], index: 12, kind: input, shape index: {}]   ;;  %s2985_s13 = inlined_call_operand.hbm [shape: f32[1,2,32], index: 13, kind: output, shape index: {}]  }
   0x1   :  { %v49_v0 = vld [vmem:[%s2973_s1] sm:$0xf]  ;;  %v46_v2 = vld [vmem:[%s2972_s0 + $0x8] sm:$0xff]  ;;  %v47_v3 = vld [vmem:[%s2972_s0 + $0x10] sm:$0xff] }
   0x2   :  { %v45_v1 = vld [vmem:[%s2972_s0] sm:$0xff]  ;;  %1693 = vmatprep.subr.msk.mxu0 %vm70_vm0, %v49_v0 }
   0x3   :  { %1695 = vmatprep.mubr.msk.f32.mxu0 %vm57_vm1, %v45_v1 }
   0x4   :  { %18 = vsyncpa [#allocation3], 0  ;;  %1694 = vmatpush3.msk.msra.mxu0 %vm70_vm0, %v49_v0  ;;  %v48_v4 = vld [vmem:[%s2972_s0 + $0x18] sm:$0xff]  ;;  %v1826_v6 = vmov 0.0   ;;  %v429_v7 = vld [vmem:[%s2975_s3 + $0x70] sm:$0xff]  ;;  %v183_v39 = vlaneseq  ;;  %vm400_vm5 = vcmask 261120  }
   0x5   :  { %1696 = vmatmul.mubr.msk.f32.vlgmr.msra.gmra.mxu0 %vm57_vm1, %v46_v2  ;;  %v430_v5 = vld [vmem:[%s2975_s3 + $0x78] sm:$0xff]  ;;  %454 = vmatprep.subr.mxu1 %v1826_v6  ;;  %v428_v8 = vld [vmem:[%s2975_s3 + $0x68] sm:$0xff]  ;;  %v427_v9 = vld [vmem:[%s2975_s3 + $0x60] sm:$0xff]  ;;  %s1828_s20 = smov 96   ;;  %s1829_s21 = smov 64  }
   0x6   :  { %1698 = vmatprep.mubr.msk.f32.mxu0 %vm57_vm1, %v47_v3  ;;  %690 = vmatprep.subr.mxu0 %v1826_v6  ;;  %v426_v10 = vld [vmem:[%s2975_s3 + $0x58] sm:$0xff]  ;;  %v425_v11 = vld [vmem:[%s2975_s3 + $0x50] sm:$0xff]  ;;  %v424_v12 = vld [vmem:[%s2975_s3 + $0x48] sm:$0xff]  ;;  %v1985_v40 = vshrl.u32 %v183_v39, 7 }
   0x7   :  { %455 = vmatpush1.msra.mxu1 %v430_v5  ;;  %v423_v13 = vld [vmem:[%s2975_s3 + $0x40] sm:$0xff]  ;;  %v422_v14 = vld [vmem:[%s2975_s3 + $0x38] sm:$0xff]  ;;  %v421_v15 = vld [vmem:[%s2975_s3 + $0x30] sm:$0xff] }
   0x8   :  { %456 = vmatprep.subr.mxu1 %v1826_v6  ;;  %v420_v16 = vld [vmem:[%s2975_s3 + $0x28] sm:$0xff]  ;;  %v419_v17 = vld [vmem:[%s2975_s3 + $0x20] sm:$0xff]  ;;  %v418_v18 = vld [vmem:[%s2975_s3 + $0x18] sm:$0xff]  ;;  %v1988_v41 = vadd.s32 8, %v1985_v40  ;;  %v192_v43 = vand.u32 15, %v1985_v40  ;;  %v2003_v52 = vadd.s32 16, %v1985_v40 }
   0x9   :  { %1699 = vmatmul.mubr.msk.f32.gmra.mxu0 %vm57_vm1, %v48_v4  ;;  %457 = vmatpush1.msra.mxu1 %v429_v7  ;;  %v417_v19 = vld [vmem:[%s2975_s3 + $0x10] sm:$0xff]  ;;  %v416_v20 = vld [vmem:[%s2975_s3 + $0x8] sm:$0xff]  ;;  %v415_v21 = vld [vmem:[%s2975_s3] sm:$0xff]  ;;  %vm343_vm4 = vcmp.lt.s32.totalorder %v1985_v40, 6  ;;  %vm317_vm7 = vcmp.lt.s32.totalorder %v1985_v40, 1  ;;  %vm330_vm10 = vcmp.lt.s32.totalorder %v1985_v40, 7 }
   0xa   :  { %458 = vmatprep.subr.mxu1 %v1826_v6  ;;  %v1587_v22 = vld [vmem:[%s2974_s2] ss:$0 sm:$0xff]  ;;  %v434_v45 = vld [vmem:[%s2975_s3 + $0x98] sm:$0xff]  ;;  %v199_v47 = vand.u32 15, %v1988_v41  ;;  %v2000_v51 = vadd.s32 4294967295, %v192_v43  ;;  %v433_v53 = vld [vmem:[%s2975_s3 + $0x90] sm:$0xff] }
   0xb   :  { %459 = vmatpush1.msra.mxu1 %v428_v8  ;;  %v432_v56 = vld [vmem:[%s2975_s3 + $0x88] sm:$0xff]  ;;  %v431_v2 = vld [vmem:[%s2975_s3 + $0x80] sm:$0xff]  ;;  %v206_v4 = vand.u32 15, %v2003_v52  ;;  %s1827_s3 = smov 32   ;;  %vm304_vm15 = vcmp.lt.s32.totalorder %v1985_v40, 2  ;;  %vm405_vm1 = vcmask 523264  }
   0xc   :  { %460 = vmatprep.subr.mxu1 %v1826_v6  ;;  %v2018_v59 = vadd.s32 1, %v199_v47  ;;  %vm256_vm8 = vcmp.ge.s32.totalorder %v2000_v51, 0 }
   0xd   :  { %461 = vmatpush1.msra.mxu1 %v427_v9 }
   0xe   :  { %462 = vmatprep.subr.mxu1 %v1826_v6  ;;  %vm277_vm11 = vcmp.lt.s32.totalorder %v2018_v59, 16 }
   0xf   :  { %463 = vmatpush1.msra.mxu1 %v426_v10 }
  0x10   :  { %464 = vmatprep.subr.mxu1 %v1826_v6 }
  0x11   :  { %465 = vmatpush1.msra.mxu1 %v425_v11 }
  0x12   :  { %466 = vmatprep.subr.mxu1 %v1826_v6 }
  0x13   :  { %467 = vmatpush1.msra.mxu1 %v424_v12 }
  0x14   :  { %468 = vmatprep.subr.mxu1 %v1826_v6 }
  0x15   :  { %469 = vmatpush1.msra.mxu1 %v423_v13 }
  0x16   :  { %470 = vmatprep.subr.mxu1 %v1826_v6 }
  0x17   :  { %471 = vmatpush1.msra.mxu1 %v422_v14 }
  0x18   :  { %472 = vmatprep.subr.mxu1 %v1826_v6 }
  0x19   :  { %473 = vmatpush1.msra.mxu1 %v421_v15  ;;  %v2056_v15 = vadd.s32 4294967295, %v206_v4 }
  0x1a   :  { %474 = vmatprep.subr.mxu1 %v1826_v6 }
  0x1b   :  { %475 = vmatpush1.msra.mxu1 %v420_v16  ;;  %vm258_vm12 = vcmp.ge.s32.totalorder %v2056_v15, 0 }
  0x1c   :  { %476 = vmatprep.subr.mxu1 %v1826_v6 }
  0x1d   :  { %477 = vmatpush1.msra.mxu1 %v419_v17 }
  0x1e   :  { %478 = vmatprep.subr.mxu1 %v1826_v6 }
  0x1f   :  { %479 = vmatpush1.msra.mxu1 %v418_v18 }
  0x20   :  { %480 = vmatprep.subr.mxu1 %v1826_v6 }
  0x21   :  { %481 = vmatpush1.msra.mxu1 %v417_v19  ;;  %v2065_v19 = vadd.s32 24, %v1985_v40 }
  0x22   :  { %482 = vmatprep.subr.mxu1 %v1826_v6 }
  0x23   :  { %483 = vmatpush1.msra.mxu1 %v416_v20 }
  0x24   :  { %484 = vmatprep.subr.mxu1 %v1826_v6 }
  0x25   :  { %485 = vmatpush1.msra.mxu1 %v415_v21 }
  0x26   :  { %510 = vmatprep.subr.mxu1 %v1826_v6 }
  0x27   :  { %511 = vmatpush2.msra.mxu1 %v434_v45 }
  0x28   :  { %512 = vmatprep.subr.mxu1 %v1826_v6 }
  0x29   :  { %513 = vmatpush2.msra.mxu1 %v433_v53 }
  0x2a   :  { %514 = vmatprep.subr.mxu1 %v1826_v6 }
  0x2b   :  { %515 = vmatpush2.msra.mxu1 %v432_v56 }
  0x2c   :  { %516 = vmatprep.subr.mxu1 %v1826_v6 }
  0x2d   :  { %517 = vmatpush2.msra.mxu1 %v431_v2 }
  0x2e   :  { %930 = vmatprep.subr.mxu1 %v1826_v6 }
  0xc5   :  { %v1697_v23 = vpop.f32.mrf.mxu0 }
  0xc6   :  { %v146_v24 = vadd.f32 %v1697_v23, %v1587_v22  ;;  %v213_v23 = vand.u32 15, %v2065_v19 }
  0xc7   :  { %v140_v25 = vpop.f32.mrf.mxu0 }
  0xc8   :  { %v164_v26 = vmin.f32 %v146_v24, 0.0  ;;  %v141_v27 = vadd.f32 %v1587_v22, %v140_v25  ;;  %vm160_vm2 = vcmp.gt.f32.partialorder %v146_v24, 0.0 }
  0xc9   :  { %v1700_v28 = vpop.f32.mrf.mxu0 }
  0xca   :  { %v169_v29 = vmul.f32 1.442695, %v164_v26  ;;  %v163_v30 = vmin.f32 %v141_v27, 0.0  ;;  %v156_v31 = vadd.f32 %v1700_v28, %v1587_v22  ;;  %vm159_vm3 = vcmp.gt.f32.partialorder %v141_v27, 0.0 }
  0xcb   :  { %v150_v32 = vpop.f32.mrf.mxu0  ;;  %v2081_v26 = vadd.s32 1, %v213_v23 }
  0xcc   :  { %1796 = vpow2.f32 %v169_v29  ;;  %v167_v33 = vmul.f32 1.442695, %v163_v30  ;;  %v166_v34 = vmin.f32 %v156_v31, 0.0  ;;  %v151_v35 = vadd.f32 %v1587_v22, %v150_v32 }
  0xcd   :  { %vm162_vm6 = vcmp.gt.f32.partialorder %v156_v31, 0.0  ;;  %vm279_vm13 = vcmp.lt.s32.totalorder %v2081_v26, 16 }
  0xce   :  { %1798 = vpow2.f32 %v167_v33  ;;  %v173_v36 = vmul.f32 1.442695, %v166_v34  ;;  %v165_v37 = vmin.f32 %v151_v35, 0.0  ;;  %vm161_vm9 = vcmp.gt.f32.partialorder %v151_v35, 0.0 }
  0xcf   :  { %v2102_v33 = vadd.s32 4294967294, %v206_v4 }
  0xd0   :  { %1800 = vpow2.f32 %v173_v36  ;;  %v171_v38 = vmul.f32 1.442695, %v165_v37  ;;  %v2107_v36 = vadd.s32 2, %v199_v47 }
  0xd1   :  { %vm242_vm0 = vcmp.ge.s32.totalorder %v2102_v33, 0 }
  0xd2   :  { %1802 = vpow2.f32 %v171_v38 }
  0xd9   :  { %v1797_v42 = vpop.eup %1796 }
  0xda   :  { %v1594_v44 = vadd.f32 -1.0, %v1797_v42 }
  0xdb   :  { %v1799_v46 = vpop.eup %1798 }
  0xdc   :  { %v1995_v48 = vsel %vm160_vm2, %v146_v24, %v1594_v44  ;;  %v1593_v49 = vadd.f32 -1.0, %v1799_v46  ;;  %vm293_vm2 = vcmp.lt.s32.totalorder %v2107_v36, 16 }
  0xdd   :  { %v1801_v50 = vpop.eup %1800  ;;  %v340_v58 = vrot.slane %v1995_v48, 2  ;;  %v314_v3 = vrot.slane %v1995_v48, 7  ;;  %v327_v11 = vrot.slane %v1995_v48, 1  ;;  %v301_v41 = vrot.slane %v1995_v48, 6 }
  0xde   :  { %v2008_v54 = vsel %vm159_vm3, %v141_v27, %v1593_v49  ;;  %v1596_v55 = vadd.f32 -1.0, %v1801_v50  ;;  %vm410_vm3 = vcmask 785408  }
  0xdf   :  { %v339_v57 = vrot.slane %v2008_v54, 2  ;;  %v1803_v60 = vpop.eup %1802  ;;  %v313_v62 = vrot.slane %v2008_v54, 7  ;;  %v326_v8 = vrot.slane %v2008_v54, 1  ;;  %v1711_v21 = vpack.i.bf16 %v1995_v48, %v2008_v54 }
  0xe0   :  { %v2021_v61 = vsel %vm162_vm6, %v156_v31, %v1596_v55  ;;  %v1595_v63 = vadd.f32 -1.0, %v1803_v60  ;;  %v2099_v31 = vadd.s32 4294967294, %v192_v43 }
  0xe1   :  { %v346_v0 = vsel %vm343_vm4, %v339_v57, %v340_v58  ;;  %v316_v1 = vrot.slane %v2021_v61, 7  ;;  %v320_v9 = vsel %vm317_vm7, %v313_v62, %v314_v3  ;;  %v333_v17 = vsel %vm330_vm10, %v326_v8, %v327_v11 }
  0xe2   :  { %1598 = vmatprep.mubr.msk.f32.mxu1 %vm400_vm5, %v346_v0  ;;  %v2041_v5 = vsel %vm161_vm9, %v151_v35, %v1595_v63  ;;  %v329_v25 = vrot.slane %v2021_v61, 1  ;;  %v303_v32 = vrot.slane %v2021_v61, 6  ;;  %v300_v35 = vrot.slane %v2008_v54, 6 }
  0xe3   :  { %v321_v7 = vsel %vm317_vm7, %v316_v1, %v313_v62  ;;  %v328_v12 = vrot.slane %v2041_v5, 1  ;;  %v315_v16 = vrot.slane %v2041_v5, 7  ;;  %vm240_vm14 = vcmp.ge.s32.totalorder %v2099_v31, 0 }
  0xe4   :  { %v322_v10 = vsel %vm256_vm8, %v321_v7, 0.0  ;;  %v334_v29 = vsel %vm330_vm10, %v329_v25, %v326_v8  ;;  %v302_v38 = vrot.slane %v2041_v5, 6  ;;  %v308_v39 = vsel %vm304_vm15, %v303_v32, %v300_v35 }
  0xe5   :  { %v1706_v13 = vpack.i.bf16 %v320_v9, %v322_v10  ;;  %v332_v14 = vsel %vm330_vm10, %v327_v11, %v328_v12  ;;  %v319_v22 = vsel %vm317_vm7, %v314_v3, %v315_v16  ;;  %v331_v27 = vsel %vm330_vm10, %v328_v12, %v329_v25  ;;  %v666_v25 = vld [vmem:[%s2977_s5 + $0x78] sm:$0xff] }
  0xe6   :  { %v336_v18 = vsel %vm277_vm11, %v332_v14, 0.0  ;;  %v324_v24 = vsel %vm258_vm12, %v319_v22, 0.0  ;;  %v318_v28 = vsel %vm317_vm7, %v315_v16, %v316_v1  ;;  %v338_v30 = vsel %vm279_vm13, %v334_v29, 0.0  ;;  %691 = vmatpush1.msra.mxu0 %v666_v25  ;;  %v662_v29 = vld [vmem:[%s2977_s5 + $0x58] sm:$0xff] }
  0xe7   :  { %1707 = vrot.lane.b32.xlu0 %v1706_v13, %s1827_s3  ;;  %v1716_v20 = vpack.i.bf16 %v336_v18, %v333_v17  ;;  %v341_v42 = vrot.slane %v2041_v5, 2  ;;  %v309_v49 = vsel %vm240_vm14, %v308_v39, 0.0  ;;  %v306_v52 = vsel %vm304_vm15, %v301_v41, %v302_v38  ;;  %692 = vmatprep.subr.mxu0 %v1826_v6  ;;  %v656_v39 = vld [vmem:[%s2977_s5 + $0x28] sm:$0xff] }
  0xe8   :  { %v307_v62 = vsel %vm304_vm15, %v300_v35, %v301_v41  ;;  %v311_v2 = vsel %vm242_vm0, %v306_v52, 0.0  ;;  %v342_v8 = vrot.slane %v2021_v61, 2  ;;  %v2140_v9 = vadd.s32 2, %v213_v23  ;;  %v658_v35 = vld [vmem:[%s2977_s5 + $0x38] sm:$0xff] }
  0xe9   :  { %1717 = vrot.lane.b32.xlu1 %v1716_v20, %s1828_s20  ;;  %v345_v55 = vsel %vm343_vm4, %v340_v58, %v341_v42  ;;  %v305_v14 = vsel %vm304_vm15, %v302_v38, %v303_v32  ;;  %v660_v32 = vld [vmem:[%s2977_s5 + $0x48] sm:$0xff]  ;;  %v1597_v38 = vld [vmem:[%s2976_s4] ss:$0 sm:$0xff] }
  0xea   :  { %v349_v3 = vsel %vm293_vm2, %v345_v55, 0.0  ;;  %v344_v16 = vsel %vm343_vm4, %v341_v42, %v342_v8  ;;  %vm295_vm6 = vcmp.lt.s32.totalorder %v2140_v9, 16  ;;  %v347_v18 = vsel %vm343_vm4, %v342_v8, %v339_v57  ;;  %v665_v57 = vld [vmem:[%s2977_s5 + $0x70] sm:$0xff]  ;;  %v655_v42 = vld [vmem:[%s2977_s5 + $0x20] sm:$0xff] }
  0xeb   :  { %1712 = vrot.lane.b32.xlu0 %v1711_v21, %s1829_s21  ;;  %v351_v23 = vsel %vm295_vm6, %v347_v18, 0.0  ;;  %693 = vmatpush1.msra.mxu0 %v665_v57  ;;  %v1390_v9 = vld [vmem:[%s2983_s11 + $0xf0] sm:$0xff] }
  0xec   :  { %694 = vmatprep.subr.mxu0 %v1826_v6 }
  0xed   :  { %360 = vrot.lane.b32.xlu1 %v324_v24, %s1827_s3 }
  0xef   :  { %376 = vrot.lane.b32.xlu0 %v2041_v5, %s1829_s21 }
  0xf1   :  { %392 = vrot.lane.b32.xlu1 %v331_v27, %s1828_s20  ;;  %v664_v27 = vld [vmem:[%s2977_s5 + $0x68] sm:$0xff] }
  0xf2   :  { %695 = vmatpush1.msra.mxu0 %v664_v27  ;;  %v667_v27 = vld [vmem:[%s2977_s5 + $0x80] sm:$0xff] }
  0xf3   :  { %362 = vrot.lane.b32.xlu0 %v318_v28, %s1827_s3  ;;  %v663_v28 = vld [vmem:[%s2977_s5 + $0x60] sm:$0xff]  ;;  %696 = vmatprep.subr.mxu0 %v1826_v6 }
  0xf4   :  { %697 = vmatpush1.msra.mxu0 %v663_v28 }
  0xf5   :  { %378 = vrot.lane.b32.xlu1 %v2021_v61, %s1829_s21  ;;  %698 = vmatprep.subr.mxu0 %v1826_v6 }
  0xf6   :  { %699 = vmatpush1.msra.mxu0 %v662_v29 }
  0xf7   :  { %394 = vrot.lane.b32.xlu0 %v338_v30, %s1828_s20  ;;  %v661_v30 = vld [vmem:[%s2977_s5 + $0x50] sm:$0xff]  ;;  %700 = vmatprep.subr.mxu0 %v1826_v6 }
  0xf8   :  { %701 = vmatpush1.msra.mxu0 %v661_v30 }
  0xf9   :  { %702 = vmatprep.subr.mxu0 %v1826_v6 }
  0xfa   :  { %703 = vmatpush1.msra.mxu0 %v660_v32 }
  0xfb   :  { %704 = vmatprep.subr.mxu0 %v1826_v6 }
 0x159   :  { %v1708_v34 = vpop.permute.xlu0 %1707 }
 0x15a   :  { %v1709_v37 = vunpack.i.l.bf16 %v1708_v34  ;;  %v1710_v44 = vunpack.i.h.bf16 %v1708_v34  ;;  %v659_v34 = vld [vmem:[%s2977_s5 + $0x40] sm:$0xff] }
 0x15b   :  { %v1718_v43 = vpop.permute.xlu1 %1717  ;;  %705 = vmatpush1.msra.mxu0 %v659_v34 }
 0x15c   :  { %v1719_v50 = vunpack.i.l.bf16 %v1718_v43  ;;  %v401_v53 = vsel %vm400_vm5, %v309_v49, %v1709_v37  ;;  %v402_v1 = vsel %vm400_vm5, %v307_v62, %v1710_v44  ;;  %v1720_v4 = vunpack.i.h.bf16 %v1718_v43  ;;  %706 = vmatprep.subr.mxu0 %v1826_v6  ;;  %v657_v37 = vld [vmem:[%s2977_s5 + $0x30] sm:$0xff]  ;;  %v654_v44 = vld [vmem:[%s2977_s5 + $0x18] sm:$0xff]  ;;  %v652_v49 = vld [vmem:[%s2977_s5 + $0x8] sm:$0xff] }
 0x15d   :  { %v1713_v45 = vpop.permute.xlu0 %1712  ;;  %707 = vmatpush1.msra.mxu0 %v658_v35 }
 0x15e   :  { %v1715_v46 = vunpack.i.h.bf16 %v1713_v45  ;;  %v1714_v47 = vunpack.i.l.bf16 %v1713_v45  ;;  %708 = vmatprep.subr.mxu0 %v1826_v6 }
 0x15f   :  { %v361_v56 = vpop.permute.xlu1 %360  ;;  %709 = vmatpush1.msra.mxu0 %v657_v37 }
 0x160   :  { %v406_v60 = vsel %vm405_vm1, %v401_v53, %v1714_v47  ;;  %v407_v58 = vsel %vm405_vm1, %v402_v1, %v1715_v46  ;;  %v403_v7 = vsel %vm400_vm5, %v311_v2, %v361_v56  ;;  %710 = vmatprep.subr.mxu0 %v1826_v6  ;;  %v653_v47 = vld [vmem:[%s2977_s5 + $0x10] sm:$0xff]  ;;  %v651_v56 = vld [vmem:[%s2977_s5] sm:$0xff] }
 0x161   :  { %v377_v63 = vpop.permute.xlu0 %376  ;;  %v411_v0 = vsel %vm410_vm3, %v406_v60, %v1719_v50  ;;  %v412_v12 = vsel %vm410_vm3, %v407_v58, %v1720_v4  ;;  %711 = vmatpush1.msra.mxu0 %v656_v39 }
 0x162   :  { %519 = vmatmul.mubr.f32.vlgmr.msra.gmra.mxu1 %v411_v0  ;;  %v408_v13 = vsel %vm405_vm1, %v403_v7, %v377_v63  ;;  %712 = vmatprep.subr.mxu0 %v1826_v6 }
 0x163   :  { %1599 = vmatprep.mubr.msk.f32.mxu1 %vm400_vm5, %v349_v3  ;;  %v393_v10 = vpop.permute.xlu1 %392  ;;  %713 = vmatpush1.msra.mxu0 %v655_v42 }
 0x164   :  { %v413_v20 = vsel %vm410_vm3, %v408_v13, %v393_v10  ;;  %714 = vmatprep.subr.mxu0 %v1826_v6  ;;  %v670_v10 = vld [vmem:[%s2977_s5 + $0x98] sm:$0xff] }
 0x165   :  { %v363_v11 = vpop.permute.xlu0 %362  ;;  %715 = vmatpush1.msra.mxu0 %v654_v44 }
 0x166   :  { %524 = vmatmul.mubr.f32.gmra.mxu1 %v412_v12  ;;  %v404_v17 = vsel %vm400_vm5, %v305_v14, %v363_v11  ;;  %716 = vmatprep.subr.mxu0 %v1826_v6  ;;  %v669_v11 = vld [vmem:[%s2977_s5 + $0x90] sm:$0xff] }
 0x167   :  { %1600 = vmatprep.mubr.msk.f32.mxu1 %vm400_vm5, %v344_v16  ;;  %v379_v19 = vpop.permute.xlu1 %378  ;;  %717 = vmatpush1.msra.mxu0 %v653_v47 }
 0x168   :  { %v409_v21 = vsel %vm405_vm1, %v404_v17, %v379_v19  ;;  %718 = vmatprep.subr.mxu0 %v1826_v6  ;;  %v668_v19 = vld [vmem:[%s2977_s5 + $0x88] sm:$0xff] }
 0x169   :  { %v395_v22 = vpop.permute.xlu0 %394  ;;  %719 = vmatpush1.msra.mxu0 %v652_v49 }
 0x16a   :  { %529 = vmatmul.mubr.f32.gmra.mxu1 %v413_v20  ;;  %v414_v24 = vsel %vm410_vm3, %v409_v21, %v395_v22  ;;  %720 = vmatprep.subr.mxu0 %v1826_v6 }
 0x16b   :  { %1601 = vmatprep.mubr.msk.f32.mxu1 %vm400_vm5, %v351_v23  ;;  %721 = vmatpush1.msra.mxu0 %v651_v56 }
 0x16c   :  { %746 = vmatprep.subr.mxu0 %v1826_v6 }
 0x16d   :  { %747 = vmatpush2.msra.mxu0 %v670_v10 }
 0x16e   :  { %534 = vmatmul.mubr.f32.gmra.mxu1 %v414_v24  ;;  %748 = vmatprep.subr.mxu0 %v1826_v6 }
 0x16f   :  { %749 = vmatpush2.msra.mxu0 %v669_v11 }
 0x170   :  { %750 = vmatprep.subr.mxu0 %v1826_v6 }
 0x171   :  { %751 = vmatpush2.msra.mxu0 %v668_v19 }
 0x172   :  { %752 = vmatprep.subr.mxu0 %v1826_v6 }
 0x173   :  { %753 = vmatpush2.msra.mxu0 %v667_v27 }
 0x174   :  { %1166 = vmatprep.subr.mxu0 %v1826_v6 }
 0x222   :  { %v520_v43 = vpop.f32.mrf.mxu1 }
 0x223   :  { %v521_v45 = vadd.f32 %v1597_v38, %v520_v43 }
 0x224   :  { %v522_v41 = vpop.f32.mrf.mxu1 }
 0x225   :  { %v2222_v50 = vmax.f32 %v521_v45, 0.0 }
 0x226   :  { %v525_v46 = vpop.f32.mrf.mxu1 }
 0x227   :  { %v526_v52 = vadd.f32 %v1597_v38, %v525_v46  ;;  %v579_v0 = vrot.slane %v2222_v50, 2  ;;  %v543_v2 = vrot.slane %v2222_v50, 6  ;;  %v555_v57 = vrot.slane %v2222_v50, 7 }
 0x228   :  { %v527_v53 = vpop.f32.mrf.mxu1  ;;  %v567_v49 = vrot.slane %v2222_v50, 1 }
 0x229   :  { %v2225_v55 = vmax.f32 %v526_v52, 0.0 }
 0x22a   :  { %v530_v60 = vpop.f32.mrf.mxu1 }
 0x22b   :  { %v531_v62 = vadd.f32 %v1597_v38, %v530_v60  ;;  %v1721_v63 = vpack.i.bf16 %v2225_v55, %v2222_v50  ;;  %v580_v1 = vrot.slane %v2225_v55, 2  ;;  %v544_v58 = vrot.slane %v2225_v55, 6 }
 0x22c   :  { %v532_v3 = vpop.f32.mrf.mxu1  ;;  %v556_v14 = vrot.slane %v2225_v55, 7  ;;  %v568_v34 = vrot.slane %v2225_v55, 1 }
 0x22d   :  { %v541_v4 = vmax.f32 %v531_v62, 0.0  ;;  %1722 = vrot.lane.b32.xlu0 %v1721_v63, %s1829_s21  ;;  %v585_v7 = vsel %vm343_vm4, %v579_v0, %v580_v1  ;;  %v2250_v12 = vsel %vm304_vm15, %v543_v2, %v544_v58 }
 0x22e   :  { %v535_v8 = vpop.f32.mrf.mxu1  ;;  %1603 = vmatprep.mubr.msk.f32.mxu0 %vm400_vm5, %v585_v7  ;;  %v561_v42 = vsel %vm317_vm7, %v555_v57, %v556_v14  ;;  %v573_v53 = vsel %vm330_vm10, %v567_v49, %v568_v34 }
 0x22f   :  { %v536_v13 = vadd.f32 %v1597_v38, %v535_v8  ;;  %v557_v16 = vrot.slane %v541_v4, 7  ;;  %v545_v17 = vrot.slane %v541_v4, 6  ;;  %v581_v20 = vrot.slane %v541_v4, 2 }
 0x230   :  { %v537_v18 = vpop.f32.mrf.mxu1  ;;  %v569_v23 = vrot.slane %v541_v4, 1 }
 0x231   :  { %v542_v21 = vmax.f32 %v536_v13, 0.0  ;;  %v560_v22 = vsel %vm317_vm7, %v556_v14, %v557_v16  ;;  %v548_v24 = vsel %vm304_vm15, %v544_v58, %v545_v17  ;;  %v584_v28 = vsel %vm343_vm4, %v580_v1, %v581_v20 }
 0x232   :  { %v565_v25 = vsel %vm258_vm12, %v560_v22, 0.0  ;;  %v572_v39 = vsel %vm330_vm10, %v568_v34, %v569_v23  ;;  %v588_v18 = vsel %vm293_vm2, %v584_v28, 0.0  ;;  %v553_v19 = vsel %vm242_vm0, %v548_v24, 0.0  ;;  %v906_v34 = vld [vmem:[%s2979_s7 + $0x78] sm:$0xff] }
 0x233   :  { %v546_v29 = vrot.slane %v542_v21, 6  ;;  %599 = vrot.lane.b32.xlu0 %v565_v25, %s1827_s3  ;;  %v570_v30 = vrot.slane %v542_v21, 1  ;;  %v558_v32 = vrot.slane %v542_v21, 7  ;;  %v582_v35 = vrot.slane %v542_v21, 2  ;;  %931 = vmatpush1.msra.mxu1 %v906_v34 }
 0x234   :  { %v576_v52 = vsel %vm277_vm11, %v572_v39, 0.0  ;;  %932 = vmatprep.subr.mxu1 %v1826_v6  ;;  %v902_v39 = vld [vmem:[%s2979_s7 + $0x58] sm:$0xff] }
 0x235   :  { %v571_v37 = vsel %vm330_vm10, %v569_v23, %v570_v30  ;;  %v562_v38 = vsel %vm317_vm7, %v558_v32, %v555_v57  ;;  %v550_v44 = vsel %vm304_vm15, %v546_v29, %v543_v2  ;;  %v547_v45 = vsel %vm304_vm15, %v545_v17, %v546_v29 }
 0x236   :  { %v563_v43 = vsel %vm256_vm8, %v562_v38, 0.0  ;;  %v583_v46 = vsel %vm343_vm4, %v581_v20, %v582_v35  ;;  %v586_v47 = vsel %vm343_vm4, %v582_v35, %v579_v0  ;;  %v1731_v55 = vpack.i.bf16 %v576_v52, %v573_v53  ;;  %v905_v35 = vld [vmem:[%s2979_s7 + $0x70] sm:$0xff]  ;;  %v903_v38 = vld [vmem:[%s2979_s7 + $0x60] sm:$0xff] }
 0x237   :  { %631 = vrot.lane.b32.xlu0 %v571_v37, %s1828_s20  ;;  %v1726_v41 = vpack.i.bf16 %v561_v42, %v563_v43  ;;  %v559_v56 = vsel %vm317_vm7, %v557_v16, %v558_v32  ;;  %v574_v50 = vsel %vm330_vm10, %v570_v30, %v567_v49  ;;  %v551_v1 = vsel %vm240_vm14, %v550_v44, 0.0  ;;  %v904_v37 = vld [vmem:[%s2979_s7 + $0x68] sm:$0xff]  ;;  %933 = vmatpush1.msra.mxu1 %v905_v35  ;;  %v901_v42 = vld [vmem:[%s2979_s7 + $0x50] sm:$0xff]  ;;  %v899_v44 = vld [vmem:[%s2979_s7 + $0x40] sm:$0xff] }
 0x238   :  { %v578_v60 = vsel %vm279_vm13, %v574_v50, 0.0  ;;  %v590_v24 = vsel %vm295_vm6, %v586_v47, 0.0  ;;  %934 = vmatprep.subr.mxu1 %v1826_v6  ;;  %v900_v43 = vld [vmem:[%s2979_s7 + $0x48] sm:$0xff]  ;;  %v895_v52 = vld [vmem:[%s2979_s7 + $0x20] sm:$0xff] }
 0x239   :  { %1727 = vrot.lane.b32.xlu1 %v1726_v41, %s1827_s3  ;;  %935 = vmatpush1.msra.mxu1 %v904_v37  ;;  %v897_v41 = vld [vmem:[%s2979_s7 + $0x30] sm:$0xff]  ;;  %v896_v49 = vld [vmem:[%s2979_s7 + $0x28] sm:$0xff] }
 0x23a   :  { %936 = vmatprep.subr.mxu1 %v1826_v6 }
 0x23b   :  { %617 = vrot.lane.b32.xlu0 %v542_v21, %s1829_s21  ;;  %937 = vmatpush1.msra.mxu1 %v903_v38 }
 0x23c   :  { %938 = vmatprep.subr.mxu1 %v1826_v6 }
 0x23d   :  { %1732 = vrot.lane.b32.xlu1 %v1731_v55, %s1828_s20  ;;  %939 = vmatpush1.msra.mxu1 %v902_v39 }
 0x23e   :  { %940 = vmatprep.subr.mxu1 %v1826_v6 }
 0x23f   :  { %941 = vmatpush1.msra.mxu1 %v901_v42 }
 0x240   :  { %942 = vmatprep.subr.mxu1 %v1826_v6 }
 0x241   :  { %615 = vrot.lane.b32.xlu1 %v541_v4, %s1829_s21  ;;  %943 = vmatpush1.msra.mxu1 %v900_v43 }
 0x242   :  { %944 = vmatprep.subr.mxu1 %v1826_v6 }
 0x243   :  { %945 = vmatpush1.msra.mxu1 %v899_v44 }
 0x244   :  { %946 = vmatprep.subr.mxu1 %v1826_v6 }
 0x245   :  { %601 = vrot.lane.b32.xlu1 %v559_v56, %s1827_s3  ;;  %v894_v56 = vld [vmem:[%s2979_s7 + $0x18] sm:$0xff] }
 0x249   :  { %633 = vrot.lane.b32.xlu1 %v578_v60, %s1828_s20 }
 0x29f   :  { %v1723_v63 = vpop.permute.xlu0 %1722 }
 0x2a0   :  { %v1724_v58 = vunpack.i.l.bf16 %v1723_v63  ;;  %v1725_v16 = vunpack.i.h.bf16 %v1723_v63 }
 0x2a5   :  { %v600_v7 = vpop.permute.xlu0 %599 }
 0x2a6   :  { %v641_v21 = vsel %vm400_vm5, %v553_v19, %v600_v7  ;;  %v891_v7 = vld [vmem:[%s2979_s7] sm:$0xff]  ;;  %v910_v19 = vld [vmem:[%s2979_s7 + $0x98] sm:$0xff] }
 0x2a9   :  { %v632_v22 = vpop.permute.xlu0 %631 }
 0x2ab   :  { %v1728_v62 = vpop.permute.xlu1 %1727 }
 0x2ac   :  { %v1729_v0 = vunpack.i.l.bf16 %v1728_v62  ;;  %v1730_v2 = vunpack.i.h.bf16 %v1728_v62 }
 0x2ad   :  { %v618_v29 = vpop.permute.xlu0 %617 }
 0x2ae   :  { %v639_v3 = vsel %vm400_vm5, %v551_v1, %v1729_v0  ;;  %v640_v14 = vsel %vm400_vm5, %v2250_v12, %v1730_v2  ;;  %v893_v0 = vld [vmem:[%s2979_s7 + $0x10] sm:$0xff]  ;;  %v892_v1 = vld [vmem:[%s2979_s7 + $0x8] sm:$0xff] }
 0x2af   :  { %v1733_v4 = vpop.permute.xlu1 %1732  ;;  %v643_v10 = vsel %vm405_vm1, %v639_v3, %v1724_v58  ;;  %v644_v20 = vsel %vm405_vm1, %v640_v14, %v1725_v16 }
 0x2b0   :  { %v1734_v8 = vunpack.i.l.bf16 %v1733_v4  ;;  %v1735_v11 = vunpack.i.h.bf16 %v1733_v4 }
 0x2b2   :  { %v647_v13 = vsel %vm410_vm3, %v643_v10, %v1734_v8  ;;  %v648_v23 = vsel %vm410_vm3, %v644_v20, %v1735_v11  ;;  %v909_v20 = vld [vmem:[%s2979_s7 + $0x90] sm:$0xff] }
 0x2b3   :  { %v616_v17 = vpop.permute.xlu1 %615  ;;  %755 = vmatmul.mubr.f32.vlgmr.msra.gmra.mxu0 %v647_v13 }
 0x2b4   :  { %1604 = vmatprep.mubr.msk.f32.mxu0 %vm400_vm5, %v588_v18  ;;  %v645_v12 = vsel %vm405_vm1, %v641_v21, %v616_v17 }
 0x2b5   :  { %v649_v27 = vsel %vm410_vm3, %v645_v12, %v632_v22  ;;  %v908_v12 = vld [vmem:[%s2979_s7 + $0x88] sm:$0xff] }
 0x2b7   :  { %v602_v25 = vpop.permute.xlu1 %601  ;;  %760 = vmatmul.mubr.f32.gmra.mxu0 %v648_v23 }
 0x2b8   :  { %1605 = vmatprep.mubr.msk.f32.mxu0 %vm400_vm5, %v583_v46  ;;  %v642_v57 = vsel %vm400_vm5, %v547_v45, %v602_v25  ;;  %v898_v45 = vld [vmem:[%s2979_s7 + $0x38] sm:$0xff]  ;;  %v1602_v46 = vld [vmem:[%s2978_s6] ss:$0 sm:$0xff] }
 0x2b9   :  { %v646_v30 = vsel %vm405_vm1, %v642_v57, %v618_v29  ;;  %947 = vmatpush1.msra.mxu1 %v898_v45 }
 0x2ba   :  { %948 = vmatprep.subr.mxu1 %v1826_v6 }
 0x2bb   :  { %v634_v28 = vpop.permute.xlu1 %633  ;;  %765 = vmatmul.mubr.f32.gmra.mxu0 %v649_v27  ;;  %949 = vmatpush1.msra.mxu1 %v897_v41 }
 0x2bc   :  { %1606 = vmatprep.mubr.msk.f32.mxu0 %vm400_vm5, %v590_v24  ;;  %v650_v32 = vsel %vm410_vm3, %v646_v30, %v634_v28  ;;  %950 = vmatprep.subr.mxu1 %v1826_v6  ;;  %v907_v28 = vld [vmem:[%s2979_s7 + $0x80] sm:$0xff] }
 0x2bd   :  { %951 = vmatpush1.msra.mxu1 %v896_v49 }
 0x2be   :  { %952 = vmatprep.subr.mxu1 %v1826_v6 }
 0x2bf   :  { %770 = vmatmul.mubr.f32.gmra.mxu0 %v650_v32  ;;  %953 = vmatpush1.msra.mxu1 %v895_v52 }
 0x2c0   :  { %954 = vmatprep.subr.mxu1 %v1826_v6 }
 0x2c1   :  { %955 = vmatpush1.msra.mxu1 %v894_v56 }
 0x2c2   :  { %956 = vmatprep.subr.mxu1 %v1826_v6 }
 0x2c3   :  { %957 = vmatpush1.msra.mxu1 %v893_v0 }
 0x2c4   :  { %958 = vmatprep.subr.mxu1 %v1826_v6 }
 0x2c5   :  { %959 = vmatpush1.msra.mxu1 %v892_v1 }
 0x2c6   :  { %960 = vmatprep.subr.mxu1 %v1826_v6 }
 0x2c7   :  { %961 = vmatpush1.msra.mxu1 %v891_v7 }
 0x2c8   :  { %986 = vmatprep.subr.mxu1 %v1826_v6 }
 0x2c9   :  { %987 = vmatpush2.msra.mxu1 %v910_v19 }
 0x2ca   :  { %988 = vmatprep.subr.mxu1 %v1826_v6 }
 0x2cb   :  { %989 = vmatpush2.msra.mxu1 %v909_v20 }
 0x2cc   :  { %990 = vmatprep.subr.mxu1 %v1826_v6 }
 0x2cd   :  { %991 = vmatpush2.msra.mxu1 %v908_v12 }
 0x2ce   :  { %992 = vmatprep.subr.mxu1 %v1826_v6 }
 0x2cf   :  { %993 = vmatpush2.msra.mxu1 %v907_v28 }
 0x373   :  { %v756_v47 = vpop.f32.mrf.mxu0 }
 0x374   :  { %v757_v53 = vadd.f32 %v1602_v46, %v756_v47 }
 0x375   :  { %v758_v55 = vpop.f32.mrf.mxu0 }
 0x376   :  { %v775_v50 = vadd.f32 %v757_v53, %v2008_v54 }
 0x377   :  { %v761_v60 = vpop.f32.mrf.mxu0 }
 0x378   :  { %v762_v62 = vadd.f32 %v1602_v46, %v761_v60  ;;  %v2396_v2 = vmax.f32 %v775_v50, 0.0 }
 0x379   :  { %v763_v63 = vpop.f32.mrf.mxu0 }
 0x37a   :  { %v776_v54 = vadd.f32 %v762_v62, %v1995_v48  ;;  %v819_v11 = vrot.slane %v2396_v2, 2  ;;  %v795_v29 = vrot.slane %v2396_v2, 7  ;;  %v807_v43 = vrot.slane %v2396_v2, 1 }
 0x37b   :  { %v766_v3 = vpop.f32.mrf.mxu0  ;;  %v783_v53 = vrot.slane %v2396_v2, 6 }
 0x37c   :  { %v2400_v58 = vmax.f32 %v776_v54, 0.0  ;;  %v767_v4 = vadd.f32 %v1602_v46, %v766_v3 }
 0x37d   :  { %v768_v8 = vpop.f32.mrf.mxu0 }
 0x37e   :  { %v777_v10 = vadd.f32 %v767_v4, %v2041_v5  ;;  %v1736_v48 = vpack.i.bf16 %v2400_v58, %v2396_v2  ;;  %v820_v13 = vrot.slane %v2400_v58, 2  ;;  %v796_v22 = vrot.slane %v2400_v58, 7 }
 0x37f   :  { %v771_v14 = vpop.f32.mrf.mxu0  ;;  %v808_v32 = vrot.slane %v2400_v58, 1  ;;  %v784_v63 = vrot.slane %v2400_v58, 6 }
 0x380   :  { %v2412_v16 = vmax.f32 %v777_v10, 0.0  ;;  %v772_v17 = vadd.f32 %v1602_v46, %v771_v14  ;;  %1737 = vrot.lane.b32.xlu1 %v1736_v48, %s1829_s21  ;;  %v825_v5 = vsel %vm343_vm4, %v819_v11, %v820_v13  ;;  %v801_v38 = vsel %vm317_vm7, %v795_v29, %v796_v22 }
 0x381   :  { %v773_v18 = vpop.f32.mrf.mxu0  ;;  %1608 = vmatprep.mubr.msk.f32.mxu1 %vm400_vm5, %v825_v5  ;;  %v813_v45 = vsel %vm330_vm10, %v807_v43, %v808_v32 }
 0x382   :  { %v778_v21 = vadd.f32 %v772_v17, %v2021_v61  ;;  %v797_v23 = vrot.slane %v2412_v16, 7  ;;  %v809_v27 = vrot.slane %v2412_v16, 1  ;;  %v821_v62 = vrot.slane %v2412_v16, 2 }
 0x383   :  { %v785_v1 = vrot.slane %v2412_v16, 6  ;;  %v789_v17 = vsel %vm304_vm15, %v783_v53, %v784_v63 }
 0x384   :  { %v2435_v25 = vmax.f32 %v778_v21, 0.0  ;;  %v800_v57 = vsel %vm317_vm7, %v796_v22, %v797_v23  ;;  %v812_v37 = vsel %vm330_vm10, %v808_v32, %v809_v27  ;;  %v824_v48 = vsel %vm343_vm4, %v820_v13, %v821_v62 }
 0x385   :  { %v805_v61 = vsel %vm258_vm12, %v800_v57, 0.0  ;;  %v816_v44 = vsel %vm277_vm11, %v812_v37, 0.0  ;;  %v788_v5 = vsel %vm304_vm15, %v784_v63, %v785_v1 }
 0x386   :  { %839 = vrot.lane.b32.xlu1 %v805_v61, %s1827_s3  ;;  %v810_v24 = vrot.slane %v2435_v25, 1  ;;  %v798_v30 = vrot.slane %v2435_v25, 7  ;;  %v1746_v41 = vpack.i.bf16 %v816_v44, %v813_v45  ;;  %v786_v52 = vrot.slane %v2435_v25, 6  ;;  %v1141_v45 = vld [vmem:[%s2981_s9 + $0x70] sm:$0xff] }
 0x387   :  { %v822_v13 = vrot.slane %v2435_v25, 2  ;;  %v793_v12 = vsel %vm242_vm0, %v788_v5, 0.0 }
 0x388   :  { %v811_v34 = vsel %vm330_vm10, %v809_v27, %v810_v24  ;;  %v802_v35 = vsel %vm317_vm7, %v798_v30, %v795_v29  ;;  %v799_v46 = vsel %vm317_vm7, %v797_v23, %v798_v30  ;;  %v814_v47 = vsel %vm330_vm10, %v810_v24, %v807_v43 }
 0x389   :  { %v803_v39 = vsel %vm256_vm8, %v802_v35, 0.0  ;;  %v818_v49 = vsel %vm279_vm13, %v814_v47, 0.0  ;;  %v790_v55 = vsel %vm304_vm15, %v786_v52, %v783_v53  ;;  %v828_v23 = vsel %vm293_vm2, %v824_v48, 0.0  ;;  %v1138_v47 = vld [vmem:[%s2981_s9 + $0x58] sm:$0xff]  ;;  %v1135_v53 = vld [vmem:[%s2981_s9 + $0x40] sm:$0xff] }
 0x38a   :  { %871 = vrot.lane.b32.xlu1 %v811_v34, %s1828_s20  ;;  %v1741_v42 = vpack.i.bf16 %v801_v38, %v803_v39  ;;  %v791_v0 = vsel %vm240_vm14, %v790_v55, 0.0  ;;  %v823_v30 = vsel %vm343_vm4, %v821_v62, %v822_v13  ;;  %v826_v32 = vsel %vm343_vm4, %v822_v13, %v819_v11  ;;  %v1142_v11 = vld [vmem:[%s2981_s9 + $0x78] sm:$0xff]  ;;  %v1131_v62 = vld [vmem:[%s2981_s9 + $0x20] sm:$0xff] }
 0x38b   :  { %v787_v34 = vsel %vm304_vm15, %v785_v1, %v786_v52  ;;  %v830_v39 = vsel %vm295_vm6, %v826_v32, 0.0  ;;  %1167 = vmatpush1.msra.mxu0 %v1142_v11  ;;  %v1136_v52 = vld [vmem:[%s2981_s9 + $0x48] sm:$0xff]  ;;  %v1134_v55 = vld [vmem:[%s2981_s9 + $0x38] sm:$0xff] }
 0x38c   :  { %1742 = vrot.lane.b32.xlu0 %v1741_v42, %s1827_s3  ;;  %1168 = vmatprep.subr.mxu0 %v1826_v6 }
 0x38d   :  { %1169 = vmatpush1.msra.mxu0 %v1141_v45 }
 0x38e   :  { %857 = vrot.lane.b32.xlu1 %v2435_v25, %s1829_s21  ;;  %1170 = vmatprep.subr.mxu0 %v1826_v6 }
 0x390   :  { %1747 = vrot.lane.b32.xlu0 %v1746_v41, %s1828_s20  ;;  %v1140_v41 = vld [vmem:[%s2981_s9 + $0x68] sm:$0xff] }
 0x391   :  { %1171 = vmatpush1.msra.mxu0 %v1140_v41  ;;  %v1143_v41 = vld [vmem:[%s2981_s9 + $0x80] sm:$0xff] }
 0x392   :  { %1172 = vmatprep.subr.mxu0 %v1826_v6 }
 0x394   :  { %855 = vrot.lane.b32.xlu0 %v2412_v16, %s1829_s21 }
 0x398   :  { %841 = vrot.lane.b32.xlu0 %v799_v46, %s1827_s3  ;;  %v1139_v46 = vld [vmem:[%s2981_s9 + $0x60] sm:$0xff] }
 0x399   :  { %1173 = vmatpush1.msra.mxu0 %v1139_v46 }
 0x39a   :  { %1174 = vmatprep.subr.mxu0 %v1826_v6 }
 0x39b   :  { %1175 = vmatpush1.msra.mxu0 %v1138_v47 }
 0x39c   :  { %873 = vrot.lane.b32.xlu0 %v818_v49, %s1828_s20  ;;  %v1137_v49 = vld [vmem:[%s2981_s9 + $0x50] sm:$0xff]  ;;  %1176 = vmatprep.subr.mxu0 %v1826_v6 }
 0x39d   :  { %1177 = vmatpush1.msra.mxu0 %v1137_v49 }
 0x39e   :  { %1178 = vmatprep.subr.mxu0 %v1826_v6 }
 0x39f   :  { %1179 = vmatpush1.msra.mxu0 %v1136_v52 }
 0x3a0   :  { %1180 = vmatprep.subr.mxu0 %v1826_v6 }
 0x3a1   :  { %1181 = vmatpush1.msra.mxu0 %v1135_v53 }
 0x3a2   :  { %1182 = vmatprep.subr.mxu0 %v1826_v6 }
 0x3a3   :  { %1183 = vmatpush1.msra.mxu0 %v1134_v55 }
 0x3a4   :  { %1184 = vmatprep.subr.mxu0 %v1826_v6 }
 0x3f2   :  { %v1738_v50 = vpop.permute.xlu1 %1737 }
 0x3f3   :  { %v1739_v4 = vunpack.i.l.bf16 %v1738_v50  ;;  %v1740_v21 = vunpack.i.h.bf16 %v1738_v50  ;;  %v1607_v50 = vld [vmem:[%s2980_s8] ss:$0 sm:$0xff] }
 0x3f8   :  { %v840_v8 = vpop.permute.xlu1 %839 }
 0x3f9   :  { %v881_v27 = vsel %vm400_vm5, %v793_v12, %v840_v8 }
 0x3fc   :  { %v872_v61 = vpop.permute.xlu1 %871 }
 0x3fe   :  { %v1743_v56 = vpop.permute.xlu0 %1742 }
 0x3ff   :  { %v1744_v60 = vunpack.i.l.bf16 %v1743_v56  ;;  %v1745_v54 = vunpack.i.h.bf16 %v1743_v56  ;;  %v1133_v56 = vld [vmem:[%s2981_s9 + $0x30] sm:$0xff] }
 0x400   :  { %v858_v42 = vpop.permute.xlu1 %857  ;;  %1185 = vmatpush1.msra.mxu0 %v1133_v56 }
 0x401   :  { %v879_v3 = vsel %vm400_vm5, %v791_v0, %v1744_v60  ;;  %v880_v20 = vsel %vm400_vm5, %v789_v17, %v1745_v54  ;;  %1186 = vmatprep.subr.mxu0 %v1826_v6  ;;  %v1132_v60 = vld [vmem:[%s2981_s9 + $0x28] sm:$0xff]  ;;  %v1130_v0 = vld [vmem:[%s2981_s9 + $0x18] sm:$0xff]  ;;  %v1127_v17 = vld [vmem:[%s2981_s9] sm:$0xff] }
 0x402   :  { %v1748_v7 = vpop.permute.xlu0 %1747  ;;  %v883_v14 = vsel %vm405_vm1, %v879_v3, %v1739_v4  ;;  %v884_v57 = vsel %vm405_vm1, %v880_v20, %v1740_v21  ;;  %1187 = vmatpush1.msra.mxu0 %v1132_v60  ;;  %v1129_v4 = vld [vmem:[%s2981_s9 + $0x10] sm:$0xff] }
 0x403   :  { %v1749_v10 = vunpack.i.l.bf16 %v1748_v7  ;;  %v1750_v18 = vunpack.i.h.bf16 %v1748_v7  ;;  %1188 = vmatprep.subr.mxu0 %v1826_v6  ;;  %v1128_v7 = vld [vmem:[%s2981_s9 + $0x8] sm:$0xff] }
 0x404   :  { %1189 = vmatpush1.msra.mxu0 %v1131_v62 }
 0x405   :  { %v887_v19 = vsel %vm410_vm3, %v883_v14, %v1749_v10  ;;  %v888_v28 = vsel %vm410_vm3, %v884_v57, %v1750_v18  ;;  %1190 = vmatprep.subr.mxu0 %v1826_v6 }
 0x406   :  { %v856_v22 = vpop.permute.xlu0 %855  ;;  %995 = vmatmul.mubr.f32.vlgmr.msra.gmra.mxu1 %v887_v19  ;;  %1191 = vmatpush1.msra.mxu0 %v1130_v0 }
 0x407   :  { %1609 = vmatprep.mubr.msk.f32.mxu1 %vm400_vm5, %v828_v23  ;;  %v885_v24 = vsel %vm405_vm1, %v881_v27, %v856_v22  ;;  %1192 = vmatprep.subr.mxu0 %v1826_v6 }
 0x408   :  { %v889_v37 = vsel %vm410_vm3, %v885_v24, %v872_v61  ;;  %1193 = vmatpush1.msra.mxu0 %v1129_v4  ;;  %v1146_v61 = vld [vmem:[%s2981_s9 + $0x98] sm:$0xff] }
 0x409   :  { %1194 = vmatprep.subr.mxu0 %v1826_v6 }
 0x40a   :  { %1000 = vmatmul.mubr.f32.gmra.mxu1 %v888_v28  ;;  %v842_v29 = vpop.permute.xlu0 %841  ;;  %1195 = vmatpush1.msra.mxu0 %v1128_v7  ;;  %v1145_v28 = vld [vmem:[%s2981_s9 + $0x90] sm:$0xff] }
 0x40b   :  { %1610 = vmatprep.mubr.msk.f32.mxu1 %vm400_vm5, %v823_v30  ;;  %v882_v35 = vsel %vm400_vm5, %v787_v34, %v842_v29  ;;  %1196 = vmatprep.subr.mxu0 %v1826_v6 }
 0x40c   :  { %v886_v43 = vsel %vm405_vm1, %v882_v35, %v858_v42  ;;  %1197 = vmatpush1.msra.mxu0 %v1127_v17 }
 0x40d   :  { %1222 = vmatprep.subr.mxu0 %v1826_v6 }
 0x40e   :  { %v874_v38 = vpop.permute.xlu0 %873  ;;  %1005 = vmatmul.mubr.f32.gmra.mxu1 %v889_v37  ;;  %1223 = vmatpush2.msra.mxu0 %v1146_v61  ;;  %v1144_v37 = vld [vmem:[%s2981_s9 + $0x88] sm:$0xff] }
 0x40f   :  { %1611 = vmatprep.mubr.msk.f32.mxu1 %vm400_vm5, %v830_v39  ;;  %v890_v44 = vsel %vm410_vm3, %v886_v43, %v874_v38  ;;  %1224 = vmatprep.subr.mxu0 %v1826_v6 }
 0x410   :  { %1225 = vmatpush2.msra.mxu0 %v1145_v28 }
 0x411   :  { %1226 = vmatprep.subr.mxu0 %v1826_v6 }
 0x412   :  { %1010 = vmatmul.mubr.f32.gmra.mxu1 %v890_v44  ;;  %1227 = vmatpush2.msra.mxu0 %v1144_v37 }
 0x413   :  { %1228 = vmatprep.subr.mxu0 %v1826_v6 }
 0x414   :  { %1229 = vmatpush2.msra.mxu0 %v1143_v41  ;;  %v1423_v41 = vld [vmem:[%s2983_s11 + $0x1f8] sm:$0xff] }
 0x415   :  { %1658 = vmatprep.subr.mxu0 %v1423_v41 }
 0x4c6   :  { %v996_v63 = vpop.f32.mrf.mxu1 }
 0x4c7   :  { %v997_v1 = vadd.f32 %v1607_v50, %v996_v63 }
 0x4c8   :  { %v998_v54 = vpop.f32.mrf.mxu1 }
 0x4c9   :  { %v2590_v8 = vmax.f32 %v997_v1, 0.0 }
 0x4ca   :  { %v1001_v3 = vpop.f32.mrf.mxu1 }
 0x4cb   :  { %v1002_v10 = vadd.f32 %v1607_v50, %v1001_v3  ;;  %v1055_v20 = vrot.slane %v2590_v8, 2  ;;  %v1019_v22 = vrot.slane %v2590_v8, 6  ;;  %v1031_v45 = vrot.slane %v2590_v8, 7 }
 0x4cc   :  { %v1003_v48 = vpop.f32.mrf.mxu1  ;;  %v1043_v3 = vrot.slane %v2590_v8, 1 }
 0x4cd   :  { %v2593_v14 = vmax.f32 %v1002_v10, 0.0 }
 0x4ce   :  { %v1006_v5 = vpop.f32.mrf.mxu1 }
 0x4cf   :  { %v1007_v18 = vadd.f32 %v1607_v50, %v1006_v5  ;;  %v1751_v19 = vpack.i.bf16 %v2593_v14, %v2590_v8  ;;  %v1056_v21 = vrot.slane %v2593_v14, 2  ;;  %v1020_v13 = vrot.slane %v2593_v14, 6 }
 0x4d0   :  { %v1008_v23 = vpop.f32.mrf.mxu1  ;;  %v1032_v30 = vrot.slane %v2593_v14, 7  ;;  %v1044_v53 = vrot.slane %v2593_v14, 1 }
 0x4d1   :  { %v1017_v12 = vmax.f32 %v1007_v18, 0.0  ;;  %1752 = vrot.lane.b32.xlu0 %v1751_v19, %s1829_s21  ;;  %v1061_v57 = vsel %vm343_vm4, %v1055_v20, %v1056_v21  ;;  %v2618_v24 = vsel %vm304_vm15, %v1019_v22, %v1020_v13 }
 0x4d2   :  { %v1011_v27 = vpop.f32.mrf.mxu1  ;;  %1613 = vmatprep.mubr.msk.f32.mxu0 %vm400_vm5, %v1061_v57  ;;  %v1037_v60 = vsel %vm317_vm7, %v1031_v45, %v1032_v30  ;;  %v1049_v4 = vsel %vm330_vm10, %v1043_v3, %v1044_v53 }
 0x4d3   :  { %v1012_v29 = vadd.f32 %v1607_v50, %v1011_v27  ;;  %v1033_v32 = vrot.slane %v1017_v12, 7  ;;  %v1021_v34 = vrot.slane %v1017_v12, 6  ;;  %v1057_v38 = vrot.slane %v1017_v12, 2 }
 0x4d4   :  { %v1013_v35 = vpop.f32.mrf.mxu1  ;;  %v1045_v43 = vrot.slane %v1017_v12, 1 }
 0x4d5   :  { %v1018_v39 = vmax.f32 %v1012_v29, 0.0  ;;  %v1036_v42 = vsel %vm317_vm7, %v1032_v30, %v1033_v32  ;;  %v1024_v44 = vsel %vm304_vm15, %v1020_v13, %v1021_v34  ;;  %v1060_v46 = vsel %vm343_vm4, %v1056_v21, %v1057_v38 }
 0x4d6   :  { %v1041_v11 = vsel %vm258_vm12, %v1036_v42, 0.0  ;;  %v1048_v50 = vsel %vm330_vm10, %v1044_v53, %v1045_v43  ;;  %v1064_v31 = vsel %vm293_vm2, %v1060_v46, 0.0  ;;  %v1029_v61 = vsel %vm242_vm0, %v1024_v44, 0.0  ;;  %v1375_v44 = vld [vmem:[%s2983_s11 + $0x78] sm:$0xff]  ;;  %v1406_v53 = vld [vmem:[%s2983_s11 + $0x170] sm:$0xff] }
 0x4d7   :  { %v1022_v47 = vrot.slane %v1018_v39, 6  ;;  %1075 = vrot.lane.b32.xlu0 %v1041_v11, %s1827_s3  ;;  %v1046_v49 = vrot.slane %v1018_v39, 1  ;;  %v1034_v52 = vrot.slane %v1018_v39, 7  ;;  %v1058_v15 = vrot.slane %v1018_v39, 2  ;;  %v1374_v11 = vld [vmem:[%s2983_s11 + $0x70] sm:$0xff]  ;;  %v1407_v46 = vld [vmem:[%s2983_s11 + $0x178] sm:$0xff] }
 0x4d8   :  { %v1052_v51 = vsel %vm277_vm11, %v1048_v50, 0.0  ;;  %v1387_v50 = vld [vmem:[%s2983_s11 + $0xd8] sm:$0xff] }
 0x4d9   :  { %v1047_v55 = vsel %vm330_vm10, %v1045_v43, %v1046_v49  ;;  %v1038_v56 = vsel %vm317_vm7, %v1034_v52, %v1031_v45  ;;  %v1026_v6 = vsel %vm304_vm15, %v1022_v47, %v1019_v22  ;;  %v1023_v63 = vsel %vm304_vm15, %v1021_v34, %v1022_v47  ;;  %v1391_v43 = vld [vmem:[%s2983_s11 + $0xf8] sm:$0xff]  ;;  %v1389_v45 = vld [vmem:[%s2983_s11 + $0xe8] sm:$0xff] }
 0x4da   :  { %v1039_v62 = vsel %vm256_vm8, %v1038_v56, 0.0  ;;  %v1059_v1 = vsel %vm343_vm4, %v1057_v38, %v1058_v15  ;;  %v1062_v54 = vsel %vm343_vm4, %v1058_v15, %v1055_v20  ;;  %v1761_v7 = vpack.i.bf16 %v1052_v51, %v1049_v4  ;;  %1623 = vmatprep.subr.mxu1 %v1391_v43  ;;  %v1373_v47 = vld [vmem:[%s2983_s11 + $0x68] sm:$0xff]  ;;  %v1418_v51 = vld [vmem:[%s2983_s11 + $0x1d0] sm:$0xff] }
 0x4db   :  { %1107 = vrot.lane.b32.xlu0 %v1047_v55, %s1828_s20  ;;  %v1756_v0 = vpack.i.bf16 %v1037_v60, %v1039_v62  ;;  %v1035_v10 = vsel %vm317_vm7, %v1033_v32, %v1034_v52  ;;  %v1050_v59 = vsel %vm330_vm10, %v1046_v49, %v1043_v3  ;;  %v1027_v5 = vsel %vm240_vm14, %v1026_v6, 0.0  ;;  %1624 = vmatpush3.msra.mxu1 %v1375_v44  ;;  %v1422_v49 = vld [vmem:[%s2983_s11 + $0x1f0] sm:$0xff]  ;;  %v1388_v52 = vld [vmem:[%s2983_s11 + $0xe0] sm:$0xff]  ;;  %v1421_v15 = vld [vmem:[%s2983_s11 + $0x1e8] sm:$0xff] }
 0x4dc   :  { %v1054_v8 = vsel %vm279_vm13, %v1050_v59, 0.0  ;;  %v1066_v33 = vsel %vm295_vm6, %v1062_v54, 0.0  ;;  %1625 = vmatprep.subr.mxu1 %v1390_v9  ;;  %v1372_v55 = vld [vmem:[%s2983_s11 + $0x60] sm:$0xff]  ;;  %v1405_v56 = vld [vmem:[%s2983_s11 + $0x168] sm:$0xff]  ;;  %v1371_v62 = vld [vmem:[%s2983_s11 + $0x58] sm:$0xff]  ;;  %vm1262_vm4 = vcmask 1041409  }
 0x4dd   :  { %1757 = vrot.lane.b32.xlu1 %v1756_v0, %s1827_s3  ;;  %1626 = vmatpush3.msra.mxu1 %v1374_v11  ;;  %v1420_v60 = vld [vmem:[%s2983_s11 + $0x1e0] sm:$0xff]  ;;  %v1419_v0 = vld [vmem:[%s2983_s11 + $0x1d8] sm:$0xff]  ;;  %v1385_v3 = vld [vmem:[%s2983_s11 + $0xc8] sm:$0xff] }
 0x4de   :  { %1627 = vmatprep.subr.mxu1 %v1389_v45  ;;  %v1404_v6 = vld [vmem:[%s2983_s11 + $0x160] sm:$0xff]  ;;  %v1403_v54 = vld [vmem:[%s2983_s11 + $0x158] sm:$0xff]  ;;  %v1369_v4 = vld [vmem:[%s2983_s11 + $0x48] sm:$0xff] }
 0x4df   :  { %1093 = vrot.lane.b32.xlu0 %v1018_v39, %s1829_s21  ;;  %1628 = vmatpush3.msra.mxu1 %v1373_v47  ;;  %v1417_v59 = vld [vmem:[%s2983_s11 + $0x1c8] sm:$0xff]  ;;  %v1378_v9 = vld [vmem:[%s2983_s11 + $0x90] sm:$0xff] }
 0x4e0   :  { %1629 = vmatprep.subr.mxu1 %v1388_v52  ;;  %v1413_v44 = vld [vmem:[%s2983_s11 + $0x1a8] sm:$0xff]  ;;  %v1412_v52 = vld [vmem:[%s2983_s11 + $0x1a0] sm:$0xff] }
 0x4e1   :  { %1762 = vrot.lane.b32.xlu1 %v1761_v7, %s1828_s20  ;;  %1630 = vmatpush3.msra.mxu1 %v1372_v55  ;;  %v1402_v7 = vld [vmem:[%s2983_s11 + $0x150] sm:$0xff]  ;;  %v1397_v11 = vld [vmem:[%s2983_s11 + $0x128] sm:$0xff] }
 0x4e2   :  { %1631 = vmatprep.subr.mxu1 %v1387_v50  ;;  %v1396_v50 = vld [vmem:[%s2983_s11 + $0x120] sm:$0xff] }
 0x4e3   :  { %1632 = vmatpush3.msra.mxu1 %v1371_v62 }
 0x4e5   :  { %1091 = vrot.lane.b32.xlu1 %v1017_v12, %s1829_s21 }
 0x4e9   :  { %1077 = vrot.lane.b32.xlu1 %v1035_v10, %s1827_s3  ;;  %v1384_v10 = vld [vmem:[%s2983_s11 + $0xc0] sm:$0xff] }
 0x4ed   :  { %1109 = vrot.lane.b32.xlu1 %v1054_v8, %s1828_s20  ;;  %v1368_v8 = vld [vmem:[%s2983_s11 + $0x40] sm:$0xff] }
 0x543   :  { %v1753_v14 = vpop.permute.xlu0 %1752 }
 0x544   :  { %v1754_v20 = vunpack.i.l.bf16 %v1753_v14  ;;  %v1755_v57 = vunpack.i.h.bf16 %v1753_v14  ;;  %v1383_v14 = vld [vmem:[%s2983_s11 + $0xb8] sm:$0xff] }
 0x549   :  { %v1076_v22 = vpop.permute.xlu0 %1075 }
 0x54a   :  { %v1117_v29 = vsel %vm400_vm5, %v1029_v61, %v1076_v22  ;;  %v1399_v22 = vld [vmem:[%s2983_s11 + $0x138] sm:$0xff] }
 0x54d   :  { %v1108_v30 = vpop.permute.xlu0 %1107 }
 0x54f   :  { %v1758_v48 = vpop.permute.xlu1 %1757 }
 0x550   :  { %v1759_v17 = vunpack.i.l.bf16 %v1758_v48  ;;  %v1760_v18 = vunpack.i.h.bf16 %v1758_v48  ;;  %v1401_v48 = vld [vmem:[%s2983_s11 + $0x148] sm:$0xff] }
 0x551   :  { %v1094_v38 = vpop.permute.xlu0 %1093 }
 0x552   :  { %v1115_v19 = vsel %vm400_vm5, %v1027_v5, %v1759_v17  ;;  %v1116_v12 = vsel %vm400_vm5, %v2618_v24, %v1760_v18  ;;  %v1416_v17 = vld [vmem:[%s2983_s11 + $0x1c0] sm:$0xff]  ;;  %v1367_v5 = vld [vmem:[%s2983_s11 + $0x38] sm:$0xff] }
 0x553   :  { %v1763_v21 = vpop.permute.xlu1 %1762  ;;  %v1119_v40 = vsel %vm405_vm1, %v1115_v19, %v1754_v20  ;;  %v1120_v28 = vsel %vm405_vm1, %v1116_v12, %v1755_v57  ;;  %v1400_v18 = vld [vmem:[%s2983_s11 + $0x140] sm:$0xff]  ;;  %v1382_v19 = vld [vmem:[%s2983_s11 + $0xb0] sm:$0xff]  ;;  %v1415_v20 = vld [vmem:[%s2983_s11 + $0x1b8] sm:$0xff] }
 0x554   :  { %v1764_v23 = vunpack.i.l.bf16 %v1763_v21  ;;  %v1765_v13 = vunpack.i.h.bf16 %v1763_v21  ;;  %v1366_v21 = vld [vmem:[%s2983_s11 + $0x30] sm:$0xff]  ;;  %v1364_v12 = vld [vmem:[%s2983_s11 + $0x20] sm:$0xff] }
 0x555   :  { %v1612_v57 = vld [vmem:[%s2982_s10] ss:$0 sm:$0xff] }
 0x556   :  { %v1123_v26 = vsel %vm410_vm3, %v1119_v40, %v1764_v23  ;;  %v1124_v32 = vsel %vm410_vm3, %v1120_v28, %v1765_v13  ;;  %v1381_v23 = vld [vmem:[%s2983_s11 + $0xa8] sm:$0xff]  ;;  %v1414_v40 = vld [vmem:[%s2983_s11 + $0x1b0] sm:$0xff] }
 0x557   :  { %v1092_v27 = vpop.permute.xlu1 %1091  ;;  %1231 = vmatmul.mubr.f32.vlgmr.msra.gmra.mxu0 %v1123_v26  ;;  %v1365_v13 = vld [vmem:[%s2983_s11 + $0x28] sm:$0xff]  ;;  %v1380_v26 = vld [vmem:[%s2983_s11 + $0xa0] sm:$0xff] }
 0x558   :  { %1614 = vmatprep.mubr.msk.f32.mxu0 %vm400_vm5, %v1064_v31  ;;  %v1121_v24 = vsel %vm405_vm1, %v1117_v29, %v1092_v27  ;;  %1659 = vmatpush3.msra.mxu0 %v1407_v46 }
 0x559   :  { %v1125_v35 = vsel %vm410_vm3, %v1121_v24, %v1108_v30  ;;  %1660 = vmatprep.subr.mxu0 %v1422_v49  ;;  %v1362_v49 = vld [vmem:[%s2983_s11 + $0x10] sm:$0xff] }
 0x55a   :  { %1661 = vmatpush3.msra.mxu0 %v1406_v53 }
 0x55b   :  { %v1078_v34 = vpop.permute.xlu1 %1077  ;;  %1236 = vmatmul.mubr.f32.gmra.mxu0 %v1124_v32  ;;  %1662 = vmatprep.subr.mxu0 %v1421_v15 }
 0x55c   :  { %1615 = vmatprep.mubr.msk.f32.mxu0 %vm400_vm5, %v1059_v1  ;;  %v1118_v36 = vsel %vm400_vm5, %v1023_v63, %v1078_v34  ;;  %v1386_v63 = vld [vmem:[%s2983_s11 + $0xd0] sm:$0xff]  ;;  %1663 = vmatpush3.msra.mxu0 %v1405_v56  ;;  %v1377_v56 = vld [vmem:[%s2983_s11 + $0x88] sm:$0xff] }
 0x55d   :  { %v1122_v39 = vsel %vm405_vm1, %v1118_v36, %v1094_v38  ;;  %v1370_v1 = vld [vmem:[%s2983_s11 + $0x50] sm:$0xff]  ;;  %1664 = vmatprep.subr.mxu0 %v1420_v60  ;;  %1633 = vmatprep.subr.mxu1 %v1386_v63  ;;  %v1379_v38 = vld [vmem:[%s2983_s11 + $0x98] sm:$0xff]  ;;  %v1361_v60 = vld [vmem:[%s2983_s11 + $0x8] sm:$0xff] }
 0x55e   :  { %1665 = vmatpush3.msra.mxu0 %v1404_v6  ;;  %1634 = vmatpush3.msra.mxu1 %v1370_v1 }
 0x55f   :  { %v1110_v37 = vpop.permute.xlu1 %1109  ;;  %1241 = vmatmul.mubr.f32.gmra.mxu0 %v1125_v35  ;;  %1666 = vmatprep.subr.mxu0 %v1419_v0 }
 0x560   :  { %1616 = vmatprep.mubr.msk.f32.mxu0 %vm400_vm5, %v1066_v33  ;;  %v1126_v42 = vsel %vm410_vm3, %v1122_v39, %v1110_v37  ;;  %1667 = vmatpush3.msra.mxu0 %v1403_v54  ;;  %v1363_v39 = vld [vmem:[%s2983_s11 + $0x18] sm:$0xff] }
 0x561   :  { %1635 = vmatprep.subr.mxu1 %v1385_v3  ;;  %1668 = vmatprep.subr.mxu0 %v1418_v51  ;;  %v1411_v54 = vld [vmem:[%s2983_s11 + $0x198] sm:$0xff]  ;;  %v1376_v3 = vld [vmem:[%s2983_s11 + $0x80] sm:$0xff] }
 0x562   :  { %1636 = vmatpush3.msra.mxu1 %v1369_v4  ;;  %1669 = vmatpush3.msra.mxu0 %v1402_v7  ;;  %v1395_v51 = vld [vmem:[%s2983_s11 + $0x118] sm:$0xff] }
 0x563   :  { %1246 = vmatmul.mubr.f32.gmra.mxu0 %v1126_v42  ;;  %1637 = vmatprep.subr.mxu1 %v1384_v10 }
 0x564   :  { %1670 = vmatprep.subr.mxu0 %v1417_v59  ;;  %1638 = vmatpush3.msra.mxu1 %v1368_v8  ;;  %v1360_v8 = vld [vmem:[%s2983_s11] sm:$0xff] }
 0x565   :  { %1671 = vmatpush3.msra.mxu0 %v1401_v48  ;;  %1639 = vmatprep.subr.mxu1 %v1383_v14 }
 0x566   :  { %1672 = vmatprep.subr.mxu0 %v1416_v17  ;;  %1640 = vmatpush3.msra.mxu1 %v1367_v5  ;;  %v1410_v5 = vld [vmem:[%s2983_s11 + $0x190] sm:$0xff] }
 0x567   :  { %1673 = vmatpush3.msra.mxu0 %v1400_v18  ;;  %1641 = vmatprep.subr.mxu1 %v1382_v19 }
 0x568   :  { %1674 = vmatprep.subr.mxu0 %v1415_v20  ;;  %1642 = vmatpush3.msra.mxu1 %v1366_v21 }
 0x569   :  { %1675 = vmatpush3.msra.mxu0 %v1399_v22  ;;  %1643 = vmatprep.subr.mxu1 %v1381_v23 }
 0x56a   :  { %1676 = vmatprep.subr.mxu0 %v1414_v40  ;;  %1644 = vmatpush3.msra.mxu1 %v1365_v13 }
 0x56b   :  { %1645 = vmatprep.subr.mxu1 %v1380_v26 }
 0x56c   :  { %1646 = vmatpush3.msra.mxu1 %v1364_v12 }
 0x56d   :  { %1647 = vmatprep.subr.mxu1 %v1379_v38 }
 0x56e   :  { %1648 = vmatpush3.msra.mxu1 %v1363_v39  ;;  %v1392_v39 = vld [vmem:[%s2983_s11 + $0x100] sm:$0xff] }
 0x56f   :  { %1649 = vmatprep.subr.mxu1 %v1378_v9 }
 0x570   :  { %1650 = vmatpush3.msra.mxu1 %v1362_v49 }
 0x571   :  { %1651 = vmatprep.subr.mxu1 %v1377_v56 }
 0x572   :  { %1652 = vmatpush3.msra.mxu1 %v1361_v60 }
 0x573   :  { %1653 = vmatprep.subr.mxu1 %v1376_v3 }
 0x574   :  { %1654 = vmatpush3.msra.mxu1 %v1360_v8 }
 0x617   :  { %v1232_v27 = vpop.f32.mrf.mxu0 }
 0x618   :  { %v1233_v31 = vadd.f32 %v1612_v57, %v1232_v27 }
 0x619   :  { %v1234_v61 = vpop.f32.mrf.mxu0 }
 0x61a   :  { %v1251_v28 = vadd.f32 %v1233_v31, %v2396_v2  ;;  %v1398_v2 = vld [vmem:[%s2983_s11 + $0x130] sm:$0xff]  ;;  %v1409_v61 = vld [vmem:[%s2983_s11 + $0x188] sm:$0xff] }
 0x61b   :  { %v1237_v29 = vpop.f32.mrf.mxu0  ;;  %1677 = vmatpush3.msra.mxu0 %v1398_v2  ;;  %v1394_v31 = vld [vmem:[%s2983_s11 + $0x110] sm:$0xff] }
 0x61c   :  { %v1238_v30 = vadd.f32 %v1612_v57, %v1237_v29  ;;  %v2834_v24 = vmax.f32 %v1251_v28, 0.0  ;;  %1678 = vmatprep.subr.mxu0 %v1413_v44  ;;  %v1393_v28 = vld [vmem:[%s2983_s11 + $0x108] sm:$0xff] }
 0x61d   :  { %v1239_v32 = vpop.f32.mrf.mxu0  ;;  %1679 = vmatpush3.msra.mxu0 %v1397_v11 }
 0x61e   :  { %v1252_v34 = vadd.f32 %v1238_v30, %v2400_v58  ;;  %v1270_v58 = vrot.slane %v2834_v24, 2  ;;  %v1292_v43 = vrot.slane %v2834_v24, 6  ;;  %v1265_v45 = vrot.slane %v2834_v24, 1  ;;  %1680 = vmatprep.subr.mxu0 %v1412_v52 }
 0x61f   :  { %v1242_v36 = vpop.f32.mrf.mxu0  ;;  %v1286_v41 = vrot.slane %v2834_v24, 5  ;;  %v1276_v46 = vrot.slane %v2834_v24, 3  ;;  %v1298_v47 = vrot.slane %v2834_v24, 7  ;;  %v1282_v62 = vrot.slane %v2834_v24, 4  ;;  %1681 = vmatpush3.msra.mxu0 %v1396_v50 }
 0x620   :  { %v2837_v35 = vmax.f32 %v1252_v34, 0.0  ;;  %v1243_v37 = vadd.f32 %v1612_v57, %v1242_v36  ;;  %1682 = vmatprep.subr.mxu0 %v1411_v54  ;;  %v1408_v36 = vld [vmem:[%s2983_s11 + $0x180] sm:$0xff] }
 0x621   :  { %v1244_v33 = vpop.f32.mrf.mxu0  ;;  %1683 = vmatpush3.msra.mxu0 %v1395_v51 }
 0x622   :  { %v1253_v42 = vadd.f32 %v1243_v37, %v2412_v16  ;;  %v1309_v55 = vrot.slane %v2837_v35, 1  ;;  %v1330_v63 = vrot.slane %v2837_v35, 5  ;;  %v1314_v0 = vrot.slane %v2837_v35, 2  ;;  %1684 = vmatprep.subr.mxu0 %v1410_v5 }
 0x623   :  { %v1247_v16 = vpop.f32.mrf.mxu0  ;;  %v1320_v1 = vrot.slane %v2837_v35, 3  ;;  %v1342_v59 = vrot.slane %v2837_v35, 7  ;;  %1685 = vmatpush3.msra.mxu0 %v1394_v31  ;;  %v1326_v44 = vrot.slane %v2837_v35, 4 }
 0x624   :  { %v2870_v53 = vmax.f32 %v1253_v42, 0.0  ;;  %v1248_v15 = vadd.f32 %v1612_v57, %v1247_v16  ;;  %1686 = vmatprep.subr.mxu0 %v1409_v61 }
 0x625   :  { %v1249_v6 = vpop.f32.mrf.mxu0  ;;  %1687 = vmatpush3.msra.mxu0 %v1393_v28 }
 0x626   :  { %v1254_v4 = vadd.f32 %v1248_v15, %v2435_v25  ;;  %v1271_v7 = vrot.slane %v2870_v53, 1  ;;  %v1293_v10 = vrot.slane %v2870_v53, 5  ;;  %v1287_v48 = vrot.slane %v2870_v53, 4  ;;  %1688 = vmatprep.subr.mxu0 %v1408_v36 }
 0x627   :  { %v1277_v14 = vrot.slane %v2870_v53, 2  ;;  %v1299_v17 = vrot.slane %v2870_v53, 6  ;;  %v1261_v25 = vrot.slane %v2870_v53, 7  ;;  %v1283_v21 = vrot.slane %v2870_v53, 3  ;;  %1689 = vmatpush3.msra.mxu0 %v1392_v39 }
 0x628   :  { %v1258_v18 = vmax.f32 %v1254_v4, 0.0  ;;  %v1272_v19 = vsel %vm1262_vm4, %v1271_v7, %v1270_v58  ;;  %v1294_v20 = vsel %vm1262_vm4, %v1293_v10, %v1292_v43  ;;  %v1266_v23 = vsel %vm1262_vm4, %v2870_v53, %v1265_v45 }
 0x629   :  { %v1771_v22 = vpack.i.bf16 %v1272_v19, %v1294_v20  ;;  %v1288_v40 = vsel %vm1262_vm4, %v1287_v48, %v1286_v41  ;;  %v1278_v13 = vsel %vm1262_vm4, %v1277_v14, %v1276_v46  ;;  %v1300_v12 = vsel %vm1262_vm4, %v1299_v17, %v1298_v47 }
 0x62a   :  { %v1766_v26 = vpack.i.bf16 %v1266_v23, %v1288_v40  ;;  %v1310_v57 = vsel %vm1262_vm4, %v1258_v18, %v1309_v55  ;;  %v1331_v27 = vrot.slane %v1258_v18, 4  ;;  %v1315_v29 = vrot.slane %v1258_v18, 1 }
 0x62b   :  { %1772 = vrot.lane.b32.xlu1 %v1771_v22, %s1829_s21  ;;  %v1337_v30 = vrot.slane %v1258_v18, 5  ;;  %v1321_v32 = vrot.slane %v1258_v18, 2  ;;  %v1343_v34 = vrot.slane %v1258_v18, 6  ;;  %v1263_v33 = vsel %vm1262_vm4, %v1261_v25, %v2834_v24 }
 0x62c   :  { %1767 = vrot.lane.b32.xlu0 %v1766_v26, %s1827_s3  ;;  %v1332_v37 = vsel %vm1262_vm4, %v1331_v27, %v1330_v63  ;;  %v1306_v38 = vrot.slane %v1258_v18, 7  ;;  %v1284_v2 = vsel %vm1262_vm4, %v1283_v21, %v1282_v62  ;;  %v1776_v42 = vpack.i.bf16 %v1278_v13, %v1300_v12  ;;  %v1617_v13 = vld [vmem:[%s2984_s12] ss:$0 sm:$0xff] }
 0x62d   :  { %v1781_v58 = vpack.i.bf16 %v1310_v57, %v1332_v37  ;;  %v1336_v43 = vrot.slane %v2837_v35, 6  ;;  %v1322_v9 = vsel %vm1262_vm4, %v1321_v32, %v1320_v1  ;;  %v1344_v11 = vsel %vm1262_vm4, %v1343_v34, %v1342_v59 }
 0x62e   :  { %v1307_v24 = vsel %vm1262_vm4, %v1306_v38, %v2837_v35  ;;  %v1327_v16 = vrot.slane %v1258_v18, 3  ;;  %v1316_v45 = vsel %vm1262_vm4, %v1315_v29, %v1314_v0  ;;  %v1791_v47 = vpack.i.bf16 %v1322_v9, %v1344_v11 }
 0x62f   :  { %1782 = vrot.lane.b32.xlu1 %v1781_v58, %s1827_s3  ;;  %v1338_v41 = vsel %vm1262_vm4, %v1337_v30, %v1336_v43 }
 0x630   :  { %1777 = vrot.lane.b32.xlu0 %v1776_v42, %s1828_s20  ;;  %v1328_v46 = vsel %vm1262_vm4, %v1327_v16, %v1326_v44  ;;  %v1786_v49 = vpack.i.bf16 %v1316_v45, %v1338_v41 }
 0x633   :  { %1792 = vrot.lane.b32.xlu1 %v1791_v47, %s1828_s20  ;;  %s1830_s20 = smov [#allocation2]  }
 0x634   :  { %1787 = vrot.lane.b32.xlu0 %v1786_v49, %s1829_s21  ;;  %s1579_s21 = sshll.u32 %s1830_s20, 4  ;;  %s1580_s21 = int_to_ptr.vmem [resolvable:$true] %s1579_s21 }
 0x635   :  { %s1804_s29 = scalar_lea.vmem %s1580_s21, 32  ;;  %p1809_p1 = scmp.lt.s32.totalorder %s1580_s21, %s1580_s21 }
 0x636   :  { %p1805_p0 = scmp.ne.s32.totalorder %s1580_s21, %s1804_s29  ;;  %p1810_p2 = scmp.lt.s32.totalorder %s1804_s29, %s1804_s29 }
 0x638   :  { %p1811_p3 = por %p1810_p2, %p1809_p1 }
 0x63a   :  { %p1812_p4 = pnand %p1811_p3, %p1805_p0 }
 0x69d   :  { %v1773_v52 = vpop.permute.xlu1 %1772 }
 0x69e   :  { %v1768_v53 = vpop.permute.xlu0 %1767  ;;  %v1775_v35 = vunpack.i.h.bf16 %v1773_v52  ;;  %v1774_v56 = vunpack.i.l.bf16 %v1773_v52 }
 0x69f   :  { %v1770_v15 = vunpack.i.h.bf16 %v1768_v53  ;;  %v1769_v55 = vunpack.i.l.bf16 %v1768_v53 }
 0x6a1   :  { %v1348_v50 = vsel %vm400_vm5, %v1263_v33, %v1770_v15  ;;  %v1783_v60 = vpop.permute.xlu1 %1782  ;;  %v1351_v62 = vsel %vm400_vm5, %v1284_v2, %v1769_v55 }
 0x6a2   :  { %v1778_v6 = vpop.permute.xlu0 %1777  ;;  %v1785_v1 = vunpack.i.h.bf16 %v1783_v60  ;;  %v1784_v54 = vunpack.i.l.bf16 %v1783_v60  ;;  %v1352_v3 = vsel %vm405_vm1, %v1351_v62, %v1774_v56  ;;  %v1349_v51 = vsel %vm405_vm1, %v1348_v50, %v1775_v35 }
 0x6a3   :  { %v1780_v63 = vunpack.i.h.bf16 %v1778_v6  ;;  %v1779_v0 = vunpack.i.l.bf16 %v1778_v6 }
 0x6a4   :  { %v1354_v25 = vsel %vm400_vm5, %v1307_v24, %v1785_v1  ;;  %v1357_v5 = vsel %vm400_vm5, %v1328_v46, %v1784_v54  ;;  %vm1571_vm5 = vcmask 254976  }
 0x6a5   :  { %v1353_v4 = vsel %vm410_vm3, %v1352_v3, %v1779_v0  ;;  %v1793_v7 = vpop.permute.xlu1 %1792  ;;  %v1350_v10 = vsel %vm410_vm3, %v1349_v51, %v1780_v63 }
 0x6a6   :  { %1495 = vmatprep.mubr.f32.mxu1 %v1353_v4  ;;  %v1788_v59 = vpop.permute.xlu0 %1787  ;;  %v1795_v8 = vunpack.i.h.bf16 %v1793_v7  ;;  %v1794_v48 = vunpack.i.l.bf16 %v1793_v7 }
 0x6a7   :  { %v1790_v14 = vunpack.i.h.bf16 %v1788_v59  ;;  %v1789_v17 = vunpack.i.l.bf16 %v1788_v59  ;;  %1496 = vmatmul.mubr.f32.vlgmr.msra.gmra.mxu1 %v1350_v10 }
 0x6a9   :  { %v1355_v18 = vsel %vm405_vm1, %v1354_v25, %v1790_v14  ;;  %v1358_v19 = vsel %vm405_vm1, %v1357_v5, %v1789_v17 }
 0x6aa   :  { %v1356_v20 = vsel %vm410_vm3, %v1355_v18, %v1795_v8  ;;  %v1359_v21 = vsel %vm410_vm3, %v1358_v19, %v1794_v48 }
 0x6ab   :  { %1565 = vmatprep.mubr.f32.mxu0 %v1359_v21 }
 0x6ac   :  { %1566 = vmatmul.mubr.f32.vlgmr.msra.gmra.mxu0 %v1356_v20 }
 0x767   :  { %v1655_v22 = vpop.f32.mrf.mxu1 }
 0x769   :  { %v1656_v23 = vpop.f32.mrf.mxu1 }
 0x76a   :  { %v1657_v40 = vadd.f32 %v1656_v23, %v1655_v22 }
 0x76c   :  { %v1690_v26 = vpop.f32.mrf.mxu0  ;;  %v1498_v57 = vadd.f32 %v1657_v40, %v1617_v13 }
 0x76e   :  { %v1691_v12 = vpop.f32.mrf.mxu0 }
 0x76f   :  { %v1692_v27 = vadd.f32 %v1691_v12, %v1690_v26 }
 0x771   :  { %v1568_v31 = vadd.f32 %v1692_v27, %v1498_v57 }
 0x773   :  { %1572 = vst.msk [vmem:[#allocation2] sm:$0x3] %vm1571_vm5, %v1568_v31 }
 0x774   :  { %1815 = shalt.err (!%p1812_p4)
}
 0x775   :  { %1582 = dma.vmem_to_hbm [thread:$0]  %s1580_s21, 32, %s2985_s13, [#allocation3]  }
 0x776   :  { %1824 = dma.done.wait [#allocation3], 32  }
 0x777   :  { %1825 = vsyncadd [#allocation3], 4294967264 }
 0x778   :  { %1586 = vsyncpa [#allocation3], 1 }

</bundles_post_ra>
